<compile_context>
chip_gen: v6e
topology: v6e:2x2x1
jax: 0.10.0
libtpu: 0.0.40
codegen_flags: <defaults>
</compile_context>

<pallas_src>
import math

import jax
import jax.numpy as jnp
from jax.experimental import pallas as pl
from jax.experimental.pallas import tpu as pltpu

# ---------------- model config (small, lane-dense, consistent with BERT structure) -------------
HIDDEN = 128          # BERT-base would be 768
HEADS = 4             # BERT-base would be 12
HEAD_DIM = HIDDEN // HEADS
INTERMEDIATE = 256    # BERT-base would be 3072
LAYERS = 2            # BERT-base would be 12
VOCAB = 50
TYPE_VOCAB = 2
MAX_POS = 16
NUM_CODES = 6         # num_codes argument of MIMICPredictor
NUM_CODES_PAD = 128   # classifier output padded to a full lane group; sliced in the wrapper
LN_EPS = 1e-12        # HF BERT layer_norm_eps
BATCH = 2
SEQ = 8

# packed-slab lane offsets (all multiples of 128 -> tile-aligned Ref slices)
_QKV_END = 3 * HIDDEN                      # 384
_AO_END = 4 * HIDDEN                       # 512
_IW_END = 4 * HIDDEN + INTERMEDIATE        # 768
_BIAS_END = 5 * HIDDEN + INTERMEDIATE      # 896


# ------------------------------- fused forward kernel ------------------------------------------
def _bert_forward_kernel(
    emb_ref,       # (T, H)              f32  pre-LN embedding sum, all B*S tokens flat
    bias_ref,      # (T, T)              f32  block-diagonal additive attention bias
    emb_ln_ref,    # (2, H)              f32  [gamma; beta]
    w_h_ref,       # (L, H, 3H+H+I)      bf16 [qkv_w | attn_out_w | intermediate_w]
    o_w_ref,       # (L, I, H)           bf16 FFN output weight
    b_ref,         # (L, 1, 3H+H+I+H)    f32  [qkv_b | attn_out_b | intermediate_b | ffn_out_b]
    ln_ref,        # (L, 4, H)           f32  [attn_gamma; attn_beta; out_gamma; out_beta]
    cls_w_ref,     # (H, NCP)            bf16 (cols >= NUM_CODES are zero)
    cls_b_ref,     # (1, NCP)            f32
    logits_ref,    # out: (T, NCP)       f32  (CLS rows selected in the wrapper)
):
    H, I = HIDDEN, INTERMEDIATE

    def ln(x, g, b):
        # LayerNorm in f32 (residual add is fused by the caller passing x = residual sum)
        mean = jnp.mean(x, axis=-1, keepdims=True)
        var = jnp.mean((x - mean) ** 2, axis=-1, keepdims=True)
        return (x - mean) * jax.lax.rsqrt(var + LN_EPS) * g + b

    def mm(x, w):
        # bf16 MXU matmul, f32 accumulation; elementwise math elsewhere stays f32 (v5e-safe)
        return jnp.dot(x.astype(jnp.bfloat16), w, preferred_element_type=jnp.float32)

    # embeddings LayerNorm over all B*S tokens at once
    h = ln(emb_ref[...], emb_ln_ref[0:1, :], emb_ln_ref[1:2, :])             # (T, H) f32
    bias = bias_ref[...]                                                      # (T, T) f32

    # NOTE: Python unroll is fine at LAYERS=2; at BERT-base scale move this onto an "arbitrary"
    # grid axis with per-layer weight BlockSpecs (double-buffered weight streaming).
    for l in range(LAYERS):
        # ---- self attention: fused QKV projection (1/sqrt(d) already folded into Q weights) ----
        qkv = mm(h, w_h_ref[l, :, 0:_QKV_END]) + b_ref[l, :, 0:_QKV_END]     # (T, 3H)

        # per-head attention; contexts kept in registers, one lane-dense concat at the end
        ctx_heads = []
        for hd in range(HEADS):
            q_sl = slice(hd * HEAD_DIM, (hd + 1) * HEAD_DIM)
            k_sl = slice(H + hd * HEAD_DIM, H + (hd + 1) * HEAD_DIM)
            v_sl = slice(2 * H + hd * HEAD_DIM, 2 * H + (hd + 1) * HEAD_DIM)
            qh = qkv[:, q_sl].astype(jnp.bfloat16)
            kh = qkv[:, k_sl].astype(jnp.bfloat16)
            vh = qkv[:, v_sl].astype(jnp.bfloat16)
            # contract the last dims directly (no explicit k transpose)
            s = jax.lax.dot_general(
                qh, kh, (((1,), (1,)), ((), ())),
                preferred_element_type=jnp.float32) + bias                   # (T, T)
            m = jnp.max(s, axis=-1, keepdims=True)
            p = jnp.exp(s - m)
            denom = jnp.sum(p, axis=-1, keepdims=True)
            p = p * pl.reciprocal(denom, approx=True)
            ctx_heads.append(
                jnp.dot(p.astype(jnp.bfloat16), vh, preferred_element_type=jnp.float32))
        ctx = jnp.concatenate(ctx_heads, axis=-1)                            # (T, H) lane-dense

        attn_out = mm(ctx, w_h_ref[l, :, _QKV_END:_AO_END]) + b_ref[l, :, _QKV_END:_AO_END]
        h = ln(attn_out + h, ln_ref[l, 0:1, :], ln_ref[l, 1:2, :])           # residual fused in LN

        # ---- feed-forward ----
        inter = mm(h, w_h_ref[l, :, _AO_END:_IW_END]) + b_ref[l, :, _AO_END:_IW_END]  # (T, I)
        # TODO(synk): HF BERT uses exact erf-GELU; tanh approximation used here.
        c = 0.7978845608028654  # sqrt(2/pi)
        inter = 0.5 * inter * (1.0 + jnp.tanh(c * (inter + 0.044715 * inter * inter * inter)))
        ffn_out = mm(inter, o_w_ref[l]) + b_ref[l, :, _IW_END:_BIAS_END]     # (T, H)
        h = ln(ffn_out + h, ln_ref[l, 2:3, :], ln_ref[l, 3:4, :])            # residual fused in LN

    # ---- classifier fused into the same kernel (lane-dense padded output, unmasked stores) ----
    logits_ref[...] = mm(h, cls_w_ref[...]) + cls_b_ref[...]                 # (T, NCP)


# ------------------------------------ parameter init -------------------------------------------
def init_params(key):
    H, I, L = HIDDEN, INTERMEDIATE, LAYERS
    scale = 1.0 / math.sqrt(HEAD_DIM)

    def nrm(k, shape):
        return 0.02 * jax.random.normal(k, shape, dtype=jnp.float32)

    ks = iter(jax.random.split(key, 8))

    qkv_w = nrm(next(ks), (L, H, 3 * H))
    # fold 1/sqrt(head_dim) into the Q projection (first H output columns); the Q bias third
    # would need the same scaling if it were nonzero.
    qkv_w = qkv_w.at[:, :, :H].multiply(scale)
    ao_w = nrm(next(ks), (L, H, H))
    i_w = nrm(next(ks), (L, H, I))
    o_w = nrm(next(ks), (L, I, H))

    # packed input-dim-H weight slab: [qkv | attn-out | intermediate]  (L, H, 3H+H+I) bf16
    w_h = jnp.concatenate([qkv_w, ao_w, i_w], axis=-1).astype(jnp.bfloat16)

    # packed per-layer biases: [qkv_b(3H) | ao_b(H) | i_b(I) | o_b(H)]  -- zeros at init
    b_pack = jnp.zeros((L, 1, _BIAS_END), jnp.float32)

    # packed per-layer LN params: rows [attn_gamma, attn_beta, out_gamma, out_beta]
    ln_pack = jnp.stack(
        [jnp.ones((L, H)), jnp.zeros((L, H)), jnp.ones((L, H)), jnp.zeros((L, H))],
        axis=1).astype(jnp.float32)                                           # (L, 4, H)

    emb_ln = jnp.stack([jnp.ones((H,)), jnp.zeros((H,))], axis=0).astype(jnp.float32)  # (2, H)

    cls_w = jnp.zeros((H, NUM_CODES_PAD), jnp.float32)
    cls_w = cls_w.at[:, :NUM_CODES].set(nrm(next(ks), (H, NUM_CODES)))

    return {
        # embeddings (f32)
        "word_emb": nrm(next(ks), (VOCAB, H)),
        "pos_emb": nrm(next(ks), (MAX_POS, H)),
        "type_emb": nrm(next(ks), (TYPE_VOCAB, H)),
        "emb_ln": emb_ln,
        # packed transformer weights
        "w_h": w_h,
        "o_w": o_w.astype(jnp.bfloat16),
        "b_pack": b_pack,
        "ln_pack": ln_pack,
        # classifier (lane-padded to NUM_CODES_PAD)
        "cls_w": cls_w.astype(jnp.bfloat16),
        "cls_b": jnp.zeros((1, NUM_CODES_PAD), jnp.float32),
    }


# ------------------------------------- forward pass --------------------------------------------
def mimic_predictor_forward(params, input_ids, attention_mask):
    """Equivalent of MIMICPredictor.forward: BERT encoder -> last_hidden_state[:,0] -> Linear."""
    B, S = input_ids.shape
    T = B * S

    # embedding gather + sum and the block-diagonal mask are glue in plain JAX;
    # everything downstream runs in one fused kernel.
    word = jnp.take(params["word_emb"], input_ids.reshape(T), axis=0)        # (T, H)
    pos = jnp.tile(params["pos_emb"][:S], (B, 1))                            # (T, H)
    tok = params["type_emb"][0][None, :]                                     # token_type_ids == 0
    emb = (word + pos + tok).astype(jnp.float32)                             # (T, H)

    # additive attention bias: key must be unmasked AND belong to the same batch element
    tok_batch = jnp.repeat(jnp.arange(B, dtype=jnp.int32), S)                # (T,)
    same = tok_batch[:, None] == tok_batch[None, :]                          # (T, T)
    key_ok = (attention_mask.reshape(T) > 0)[None, :]                        # (1, T)
    bias = jnp.where(same & key_ok, 0.0, -10000.0).astype(jnp.float32)       # (T, T)

    vmem = pl.BlockSpec(memory_space=pltpu.MemorySpace.VMEM)                 # whole array in VMEM

    logits_pad = pl.pallas_call(
        _bert_forward_kernel,
        out_shape=jax.ShapeDtypeStruct((T, NUM_CODES_PAD), jnp.float32),
        in_specs=[vmem] * 9,
        out_specs=vmem,
    )(emb, bias, params["emb_ln"], params["w_h"], params["o_w"],
      params["b_pack"], params["ln_pack"], params["cls_w"], params["cls_b"])

    # CLS token of each batch element (row b*S), first NUM_CODES lanes
    return logits_pad.reshape(B, S, NUM_CODES_PAD)[:, 0, :NUM_CODES]         # (B, NUM_CODES)


# ----------------------------------------- main -------------------------------------------------
if __name__ == "__main__":
    key = jax.random.PRNGKey(0)
    k_params, k_ids = jax.random.split(key)

    B, S = BATCH, SEQ
    params = init_params(k_params)
    input_ids = jax.random.randint(k_ids, (B, S), 0, VOCAB, dtype=jnp.int32)
    attention_mask = jnp.array(
        [[1, 1, 1, 1, 1, 1, 1, 1],
         [1, 1, 1, 1, 1, 1, 0, 0]], dtype=jnp.int32)

    fwd = jax.jit(mimic_predictor_forward)
    logits = fwd(params, input_ids, attention_mask)
    jax.block_until_ready(logits)
    assert logits.shape == (B, NUM_CODES)
    assert bool(jnp.all(jnp.isfinite(logits)))
    print("KERNEL_OK")
</pallas_src>

<mosaic_0001>
module attributes {stable_mosaic.version = 11 : i64} {
  func.func @_bert_forward_kernel(%arg0: memref<16x128xf32, #tpu.memory_space<vmem>>, %arg1: memref<16x16xf32, #tpu.memory_space<vmem>>, %arg2: memref<2x128xf32, #tpu.memory_space<vmem>>, %arg3: memref<2x128x768xbf16, #tpu.memory_space<vmem>>, %arg4: memref<2x256x128xbf16, #tpu.memory_space<vmem>>, %arg5: memref<2x1x896xf32, #tpu.memory_space<vmem>>, %arg6: memref<2x4x128xf32, #tpu.memory_space<vmem>>, %arg7: memref<128x128xbf16, #tpu.memory_space<vmem>>, %arg8: memref<1x128xf32, #tpu.memory_space<vmem>>, %arg9: memref<16x128xf32, #tpu.memory_space<vmem>>) attributes {dimension_semantics = [], scalar_prefetch = 0 : i64, scratch_operands = 0 : i64, tpu.core_type = #tpu.core_type<tc>} {
    %c0 = arith.constant 0 : index
    %c0_0 = arith.constant 0 : index
    %0 = vector.load %arg0[%c0, %c0_0] : memref<16x128xf32, #tpu.memory_space<vmem>>, vector<16x128xf32>
    %c0_1 = arith.constant 0 : index
    %c0_2 = arith.constant 0 : index
    %1 = vector.load %arg2[%c0_1, %c0_2] : memref<2x128xf32, #tpu.memory_space<vmem>>, vector<1x128xf32>
    %c1 = arith.constant 1 : index
    %c0_3 = arith.constant 0 : index
    %2 = vector.load %arg2[%c1, %c0_3] : memref<2x128xf32, #tpu.memory_space<vmem>>, vector<1x128xf32>
    %cst = arith.constant dense<0.000000e+00> : vector<16xf32>
    %3 = vector.multi_reduction <add>, %0, %cst [1] : vector<16x128xf32> to vector<16xf32>
    %4 = vector.shape_cast %3 : vector<16xf32> to vector<16x1xf32>
    %cst_4 = arith.constant 1.280000e+02 : f32
    %5 = vector.broadcast %cst_4 : f32 to vector<16x1xf32>
    %6 = arith.divf %4, %5 : vector<16x1xf32>
    %7 = vector.broadcast %6 : vector<16x1xf32> to vector<16x128xf32>
    %8 = arith.subf %0, %7 : vector<16x128xf32>
    %9 = arith.mulf %8, %8 : vector<16x128xf32>
    %cst_5 = arith.constant dense<0.000000e+00> : vector<16xf32>
    %10 = vector.multi_reduction <add>, %9, %cst_5 [1] : vector<16x128xf32> to vector<16xf32>
    %11 = vector.shape_cast %10 : vector<16xf32> to vector<16x1xf32>
    %cst_6 = arith.constant 1.280000e+02 : f32
    %12 = vector.broadcast %cst_6 : f32 to vector<16x1xf32>
    %13 = arith.divf %11, %12 : vector<16x1xf32>
    %14 = vector.broadcast %6 : vector<16x1xf32> to vector<16x128xf32>
    %15 = arith.subf %0, %14 : vector<16x128xf32>
    %cst_7 = arith.constant 9.99999996E-13 : f32
    %16 = vector.broadcast %cst_7 : f32 to vector<16x1xf32>
    %17 = arith.addf %13, %16 : vector<16x1xf32>
    %18 = math.rsqrt %17 : vector<16x1xf32>
    %19 = vector.broadcast %18 : vector<16x1xf32> to vector<16x128xf32>
    %20 = arith.mulf %15, %19 : vector<16x128xf32>
    %21 = vector.broadcast %1 : vector<1x128xf32> to vector<16x128xf32>
    %22 = arith.mulf %20, %21 : vector<16x128xf32>
    %23 = vector.broadcast %2 : vector<1x128xf32> to vector<16x128xf32>
    %24 = arith.addf %22, %23 : vector<16x128xf32>
    %c0_8 = arith.constant 0 : index
    %c0_9 = arith.constant 0 : index
    %25 = vector.load %arg1[%c0_8, %c0_9] : memref<16x16xf32, #tpu.memory_space<vmem>>, vector<16x16xf32>
    %c0_10 = arith.constant 0 : index
    %c0_11 = arith.constant 0 : index
    %c0_12 = arith.constant 0 : index
    %26 = vector.load %arg3[%c0_10, %c0_11, %c0_12] : memref<2x128x768xbf16, #tpu.memory_space<vmem>>, vector<1x128x384xbf16>
    %27 = vector.shape_cast %26 : vector<1x128x384xbf16> to vector<128x384xbf16>
    %28 = arith.truncf %24 : vector<16x128xf32> to vector<16x128xbf16>
    %cst_13 = arith.constant dense<0.000000e+00> : vector<16x384xf32>
    %29 = tpu.matmul %28, %27, %cst_13 {dimension_numbers = #tpu.dot_dimension_numbers<[1], [0], [0], [1], [0, 0, 1, 1], [], []>} : vector<16x128xbf16>, vector<128x384xbf16>, vector<16x384xf32> -> vector<16x384xf32>
    %c0_14 = arith.constant 0 : index
    %c0_15 = arith.constant 0 : index
    %c0_16 = arith.constant 0 : index
    %30 = vector.load %arg5[%c0_14, %c0_15, %c0_16] : memref<2x1x896xf32, #tpu.memory_space<vmem>>, vector<1x1x384xf32>
    %31 = vector.shape_cast %30 : vector<1x1x384xf32> to vector<1x384xf32>
    %32 = vector.broadcast %31 : vector<1x384xf32> to vector<16x384xf32>
    %33 = arith.addf %29, %32 : vector<16x384xf32>
    %34 = vector.extract_strided_slice %33 {offsets = [0, 0], sizes = [16, 32], strides = [1, 1]} : vector<16x384xf32> to vector<16x32xf32>
    %35 = arith.truncf %34 : vector<16x32xf32> to vector<16x32xbf16>
    %36 = vector.extract_strided_slice %33 {offsets = [0, 128], sizes = [16, 32], strides = [1, 1]} : vector<16x384xf32> to vector<16x32xf32>
    %37 = arith.truncf %36 : vector<16x32xf32> to vector<16x32xbf16>
    %38 = vector.extract_strided_slice %33 {offsets = [0, 256], sizes = [16, 32], strides = [1, 1]} : vector<16x384xf32> to vector<16x32xf32>
    %39 = arith.truncf %38 : vector<16x32xf32> to vector<16x32xbf16>
    %cst_17 = arith.constant dense<0.000000e+00> : vector<16x16xf32>
    %40 = tpu.matmul %35, %37, %cst_17 {dimension_numbers = #tpu.dot_dimension_numbers<[1], [1], [0], [0], [0, 0, 1, 0], [], []>} : vector<16x32xbf16>, vector<16x32xbf16>, vector<16x16xf32> -> vector<16x16xf32>
    %41 = arith.addf %40, %25 : vector<16x16xf32>
    %cst_18 = arith.constant dense<0xFF800000> : vector<16xf32>
    %42 = vector.multi_reduction <maximumf>, %41, %cst_18 [1] : vector<16x16xf32> to vector<16xf32>
    %43 = vector.shape_cast %42 : vector<16xf32> to vector<16x1xf32>
    %44 = vector.broadcast %43 : vector<16x1xf32> to vector<16x16xf32>
    %45 = arith.subf %41, %44 : vector<16x16xf32>
    %46 = math.exp %45 : vector<16x16xf32>
    %cst_19 = arith.constant dense<0.000000e+00> : vector<16xf32>
    %47 = vector.multi_reduction <add>, %46, %cst_19 [1] : vector<16x16xf32> to vector<16xf32>
    %48 = vector.shape_cast %47 : vector<16xf32> to vector<16x1xf32>
    %49 = tpu.reciprocal %48 {approx = true} : vector<16x1xf32> -> vector<16x1xf32>
    %50 = vector.broadcast %49 : vector<16x1xf32> to vector<16x16xf32>
    %51 = arith.mulf %46, %50 : vector<16x16xf32>
    %52 = arith.truncf %51 : vector<16x16xf32> to vector<16x16xbf16>
    %cst_20 = arith.constant dense<0.000000e+00> : vector<16x32xf32>
    %53 = tpu.matmul %52, %39, %cst_20 {dimension_numbers = #tpu.dot_dimension_numbers<[1], [0], [0], [1], [0, 0, 1, 1], [], []>} : vector<16x16xbf16>, vector<16x32xbf16>, vector<16x32xf32> -> vector<16x32xf32>
    %54 = vector.extract_strided_slice %33 {offsets = [0, 32], sizes = [16, 32], strides = [1, 1]} : vector<16x384xf32> to vector<16x32xf32>
    %55 = arith.truncf %54 : vector<16x32xf32> to vector<16x32xbf16>
    %56 = vector.extract_strided_slice %33 {offsets = [0, 160], sizes = [16, 32], strides = [1, 1]} : vector<16x384xf32> to vector<16x32xf32>
    %57 = arith.truncf %56 : vector<16x32xf32> to vector<16x32xbf16>
    %58 = vector.extract_strided_slice %33 {offsets = [0, 288], sizes = [16, 32], strides = [1, 1]} : vector<16x384xf32> to vector<16x32xf32>
    %59 = arith.truncf %58 : vector<16x32xf32> to vector<16x32xbf16>
    %cst_21 = arith.constant dense<0.000000e+00> : vector<16x16xf32>
    %60 = tpu.matmul %55, %57, %cst_21 {dimension_numbers = #tpu.dot_dimension_numbers<[1], [1], [0], [0], [0, 0, 1, 0], [], []>} : vector<16x32xbf16>, vector<16x32xbf16>, vector<16x16xf32> -> vector<16x16xf32>
    %61 = arith.addf %60, %25 : vector<16x16xf32>
    %cst_22 = arith.constant dense<0xFF800000> : vector<16xf32>
    %62 = vector.multi_reduction <maximumf>, %61, %cst_22 [1] : vector<16x16xf32> to vector<16xf32>
    %63 = vector.shape_cast %62 : vector<16xf32> to vector<16x1xf32>
    %64 = vector.broadcast %63 : vector<16x1xf32> to vector<16x16xf32>
    %65 = arith.subf %61, %64 : vector<16x16xf32>
    %66 = math.exp %65 : vector<16x16xf32>
    %cst_23 = arith.constant dense<0.000000e+00> : vector<16xf32>
    %67 = vector.multi_reduction <add>, %66, %cst_23 [1] : vector<16x16xf32> to vector<16xf32>
    %68 = vector.shape_cast %67 : vector<16xf32> to vector<16x1xf32>
    %69 = tpu.reciprocal %68 {approx = true} : vector<16x1xf32> -> vector<16x1xf32>
    %70 = vector.broadcast %69 : vector<16x1xf32> to vector<16x16xf32>
    %71 = arith.mulf %66, %70 : vector<16x16xf32>
    %72 = arith.truncf %71 : vector<16x16xf32> to vector<16x16xbf16>
    %cst_24 = arith.constant dense<0.000000e+00> : vector<16x32xf32>
    %73 = tpu.matmul %72, %59, %cst_24 {dimension_numbers = #tpu.dot_dimension_numbers<[1], [0], [0], [1], [0, 0, 1, 1], [], []>} : vector<16x16xbf16>, vector<16x32xbf16>, vector<16x32xf32> -> vector<16x32xf32>
    %74 = vector.extract_strided_slice %33 {offsets = [0, 64], sizes = [16, 32], strides = [1, 1]} : vector<16x384xf32> to vector<16x32xf32>
    %75 = arith.truncf %74 : vector<16x32xf32> to vector<16x32xbf16>
    %76 = vector.extract_strided_slice %33 {offsets = [0, 192], sizes = [16, 32], strides = [1, 1]} : vector<16x384xf32> to vector<16x32xf32>
    %77 = arith.truncf %76 : vector<16x32xf32> to vector<16x32xbf16>
    %78 = vector.extract_strided_slice %33 {offsets = [0, 320], sizes = [16, 32], strides = [1, 1]} : vector<16x384xf32> to vector<16x32xf32>
    %79 = arith.truncf %78 : vector<16x32xf32> to vector<16x32xbf16>
    %cst_25 = arith.constant dense<0.000000e+00> : vector<16x16xf32>
    %80 = tpu.matmul %75, %77, %cst_25 {dimension_numbers = #tpu.dot_dimension_numbers<[1], [1], [0], [0], [0, 0, 1, 0], [], []>} : vector<16x32xbf16>, vector<16x32xbf16>, vector<16x16xf32> -> vector<16x16xf32>
    %81 = arith.addf %80, %25 : vector<16x16xf32>
    %cst_26 = arith.constant dense<0xFF800000> : vector<16xf32>
    %82 = vector.multi_reduction <maximumf>, %81, %cst_26 [1] : vector<16x16xf32> to vector<16xf32>
    %83 = vector.shape_cast %82 : vector<16xf32> to vector<16x1xf32>
    %84 = vector.broadcast %83 : vector<16x1xf32> to vector<16x16xf32>
    %85 = arith.subf %81, %84 : vector<16x16xf32>
    %86 = math.exp %85 : vector<16x16xf32>
    %cst_27 = arith.constant dense<0.000000e+00> : vector<16xf32>
    %87 = vector.multi_reduction <add>, %86, %cst_27 [1] : vector<16x16xf32> to vector<16xf32>
    %88 = vector.shape_cast %87 : vector<16xf32> to vector<16x1xf32>
    %89 = tpu.reciprocal %88 {approx = true} : vector<16x1xf32> -> vector<16x1xf32>
    %90 = vector.broadcast %89 : vector<16x1xf32> to vector<16x16xf32>
    %91 = arith.mulf %86, %90 : vector<16x16xf32>
    %92 = arith.truncf %91 : vector<16x16xf32> to vector<16x16xbf16>
    %cst_28 = arith.constant dense<0.000000e+00> : vector<16x32xf32>
    %93 = tpu.matmul %92, %79, %cst_28 {dimension_numbers = #tpu.dot_dimension_numbers<[1], [0], [0], [1], [0, 0, 1, 1], [], []>} : vector<16x16xbf16>, vector<16x32xbf16>, vector<16x32xf32> -> vector<16x32xf32>
    %94 = vector.extract_strided_slice %33 {offsets = [0, 96], sizes = [16, 32], strides = [1, 1]} : vector<16x384xf32> to vector<16x32xf32>
    %95 = arith.truncf %94 : vector<16x32xf32> to vector<16x32xbf16>
    %96 = vector.extract_strided_slice %33 {offsets = [0, 224], sizes = [16, 32], strides = [1, 1]} : vector<16x384xf32> to vector<16x32xf32>
    %97 = arith.truncf %96 : vector<16x32xf32> to vector<16x32xbf16>
    %98 = vector.extract_strided_slice %33 {offsets = [0, 352], sizes = [16, 32], strides = [1, 1]} : vector<16x384xf32> to vector<16x32xf32>
    %99 = arith.truncf %98 : vector<16x32xf32> to vector<16x32xbf16>
    %cst_29 = arith.constant dense<0.000000e+00> : vector<16x16xf32>
    %100 = tpu.matmul %95, %97, %cst_29 {dimension_numbers = #tpu.dot_dimension_numbers<[1], [1], [0], [0], [0, 0, 1, 0], [], []>} : vector<16x32xbf16>, vector<16x32xbf16>, vector<16x16xf32> -> vector<16x16xf32>
    %101 = arith.addf %100, %25 : vector<16x16xf32>
    %cst_30 = arith.constant dense<0xFF800000> : vector<16xf32>
    %102 = vector.multi_reduction <maximumf>, %101, %cst_30 [1] : vector<16x16xf32> to vector<16xf32>
    %103 = vector.shape_cast %102 : vector<16xf32> to vector<16x1xf32>
    %104 = vector.broadcast %103 : vector<16x1xf32> to vector<16x16xf32>
    %105 = arith.subf %101, %104 : vector<16x16xf32>
    %106 = math.exp %105 : vector<16x16xf32>
    %cst_31 = arith.constant dense<0.000000e+00> : vector<16xf32>
    %107 = vector.multi_reduction <add>, %106, %cst_31 [1] : vector<16x16xf32> to vector<16xf32>
    %108 = vector.shape_cast %107 : vector<16xf32> to vector<16x1xf32>
    %109 = tpu.reciprocal %108 {approx = true} : vector<16x1xf32> -> vector<16x1xf32>
    %110 = vector.broadcast %109 : vector<16x1xf32> to vector<16x16xf32>
    %111 = arith.mulf %106, %110 : vector<16x16xf32>
    %112 = arith.truncf %111 : vector<16x16xf32> to vector<16x16xbf16>
    %cst_32 = arith.constant dense<0.000000e+00> : vector<16x32xf32>
    %113 = tpu.matmul %112, %99, %cst_32 {dimension_numbers = #tpu.dot_dimension_numbers<[1], [0], [0], [1], [0, 0, 1, 1], [], []>} : vector<16x16xbf16>, vector<16x32xbf16>, vector<16x32xf32> -> vector<16x32xf32>
    %114 = tpu.concatenate %53, %73, %93, %113 in 1 : vector<16x32xf32>, vector<16x32xf32>, vector<16x32xf32>, vector<16x32xf32> -> vector<16x128xf32>
    %c0_33 = arith.constant 0 : index
    %c0_34 = arith.constant 0 : index
    %c384 = arith.constant 384 : index
    %115 = vector.load %arg3[%c0_33, %c0_34, %c384] : memref<2x128x768xbf16, #tpu.memory_space<vmem>>, vector<1x128x128xbf16>
    %116 = vector.shape_cast %115 : vector<1x128x128xbf16> to vector<128x128xbf16>
    %117 = arith.truncf %114 : vector<16x128xf32> to vector<16x128xbf16>
    %cst_35 = arith.constant dense<0.000000e+00> : vector<16x128xf32>
    %118 = tpu.matmul %117, %116, %cst_35 {dimension_numbers = #tpu.dot_dimension_numbers<[1], [0], [0], [1], [0, 0, 1, 1], [], []>} : vector<16x128xbf16>, vector<128x128xbf16>, vector<16x128xf32> -> vector<16x128xf32>
    %c0_36 = arith.constant 0 : index
    %c0_37 = arith.constant 0 : index
    %c384_38 = arith.constant 384 : index
    %119 = vector.load %arg5[%c0_36, %c0_37, %c384_38] : memref<2x1x896xf32, #tpu.memory_space<vmem>>, vector<1x1x128xf32>
    %120 = vector.shape_cast %119 : vector<1x1x128xf32> to vector<1x128xf32>
    %121 = vector.broadcast %120 : vector<1x128xf32> to vector<16x128xf32>
    %122 = arith.addf %118, %121 : vector<16x128xf32>
    %123 = arith.addf %122, %24 : vector<16x128xf32>
    %c0_39 = arith.constant 0 : index
    %c0_40 = arith.constant 0 : index
    %c0_41 = arith.constant 0 : index
    %124 = vector.load %arg6[%c0_39, %c0_40, %c0_41] : memref<2x4x128xf32, #tpu.memory_space<vmem>>, vector<1x1x128xf32>
    %125 = vector.shape_cast %124 : vector<1x1x128xf32> to vector<1x128xf32>
    %c0_42 = arith.constant 0 : index
    %c1_43 = arith.constant 1 : index
    %c0_44 = arith.constant 0 : index
    %126 = vector.load %arg6[%c0_42, %c1_43, %c0_44] : memref<2x4x128xf32, #tpu.memory_space<vmem>>, vector<1x1x128xf32>
    %127 = vector.shape_cast %126 : vector<1x1x128xf32> to vector<1x128xf32>
    %cst_45 = arith.constant dense<0.000000e+00> : vector<16xf32>
    %128 = vector.multi_reduction <add>, %123, %cst_45 [1] : vector<16x128xf32> to vector<16xf32>
    %129 = vector.shape_cast %128 : vector<16xf32> to vector<16x1xf32>
    %cst_46 = arith.constant 1.280000e+02 : f32
    %130 = vector.broadcast %cst_46 : f32 to vector<16x1xf32>
    %131 = arith.divf %129, %130 : vector<16x1xf32>
    %132 = vector.broadcast %131 : vector<16x1xf32> to vector<16x128xf32>
    %133 = arith.subf %123, %132 : vector<16x128xf32>
    %134 = arith.mulf %133, %133 : vector<16x128xf32>
    %cst_47 = arith.constant dense<0.000000e+00> : vector<16xf32>
    %135 = vector.multi_reduction <add>, %134, %cst_47 [1] : vector<16x128xf32> to vector<16xf32>
    %136 = vector.shape_cast %135 : vector<16xf32> to vector<16x1xf32>
    %cst_48 = arith.constant 1.280000e+02 : f32
    %137 = vector.broadcast %cst_48 : f32 to vector<16x1xf32>
    %138 = arith.divf %136, %137 : vector<16x1xf32>
    %139 = vector.broadcast %131 : vector<16x1xf32> to vector<16x128xf32>
    %140 = arith.subf %123, %139 : vector<16x128xf32>
    %cst_49 = arith.constant 9.99999996E-13 : f32
    %141 = vector.broadcast %cst_49 : f32 to vector<16x1xf32>
    %142 = arith.addf %138, %141 : vector<16x1xf32>
    %143 = math.rsqrt %142 : vector<16x1xf32>
    %144 = vector.broadcast %143 : vector<16x1xf32> to vector<16x128xf32>
    %145 = arith.mulf %140, %144 : vector<16x128xf32>
    %146 = vector.broadcast %125 : vector<1x128xf32> to vector<16x128xf32>
    %147 = arith.mulf %145, %146 : vector<16x128xf32>
    %148 = vector.broadcast %127 : vector<1x128xf32> to vector<16x128xf32>
    %149 = arith.addf %147, %148 : vector<16x128xf32>
    %c0_50 = arith.constant 0 : index
    %c0_51 = arith.constant 0 : index
    %c512 = arith.constant 512 : index
    %150 = vector.load %arg3[%c0_50, %c0_51, %c512] : memref<2x128x768xbf16, #tpu.memory_space<vmem>>, vector<1x128x256xbf16>
    %151 = vector.shape_cast %150 : vector<1x128x256xbf16> to vector<128x256xbf16>
    %152 = arith.truncf %149 : vector<16x128xf32> to vector<16x128xbf16>
    %cst_52 = arith.constant dense<0.000000e+00> : vector<16x256xf32>
    %153 = tpu.matmul %152, %151, %cst_52 {dimension_numbers = #tpu.dot_dimension_numbers<[1], [0], [0], [1], [0, 0, 1, 1], [], []>} : vector<16x128xbf16>, vector<128x256xbf16>, vector<16x256xf32> -> vector<16x256xf32>
    %c0_53 = arith.constant 0 : index
    %c0_54 = arith.constant 0 : index
    %c512_55 = arith.constant 512 : index
    %154 = vector.load %arg5[%c0_53, %c0_54, %c512_55] : memref<2x1x896xf32, #tpu.memory_space<vmem>>, vector<1x1x256xf32>
    %155 = vector.shape_cast %154 : vector<1x1x256xf32> to vector<1x256xf32>
    %156 = vector.broadcast %155 : vector<1x256xf32> to vector<16x256xf32>
    %157 = arith.addf %153, %156 : vector<16x256xf32>
    %cst_56 = arith.constant 5.000000e-01 : f32
    %158 = vector.broadcast %cst_56 : f32 to vector<16x256xf32>
    %159 = arith.mulf %158, %157 : vector<16x256xf32>
    %cst_57 = arith.constant 4.471500e-02 : f32
    %160 = vector.broadcast %cst_57 : f32 to vector<16x256xf32>
    %161 = arith.mulf %160, %157 : vector<16x256xf32>
    %162 = arith.mulf %161, %157 : vector<16x256xf32>
    %163 = arith.mulf %162, %157 : vector<16x256xf32>
    %164 = arith.addf %157, %163 : vector<16x256xf32>
    %cst_58 = arith.constant 0.797884583 : f32
    %165 = vector.broadcast %cst_58 : f32 to vector<16x256xf32>
    %166 = arith.mulf %165, %164 : vector<16x256xf32>
    %167 = math.tanh %166 : vector<16x256xf32>
    %cst_59 = arith.constant 1.000000e+00 : f32
    %168 = vector.broadcast %cst_59 : f32 to vector<16x256xf32>
    %169 = arith.addf %168, %167 : vector<16x256xf32>
    %170 = arith.mulf %159, %169 : vector<16x256xf32>
    %c0_60 = arith.constant 0 : index
    %c0_61 = arith.constant 0 : index
    %c0_62 = arith.constant 0 : index
    %171 = vector.load %arg4[%c0_60, %c0_61, %c0_62] : memref<2x256x128xbf16, #tpu.memory_space<vmem>>, vector<1x256x128xbf16>
    %172 = vector.shape_cast %171 : vector<1x256x128xbf16> to vector<256x128xbf16>
    %173 = arith.truncf %170 : vector<16x256xf32> to vector<16x256xbf16>
    %cst_63 = arith.constant dense<0.000000e+00> : vector<16x128xf32>
    %174 = tpu.matmul %173, %172, %cst_63 {dimension_numbers = #tpu.dot_dimension_numbers<[1], [0], [0], [1], [0, 0, 1, 1], [], []>} : vector<16x256xbf16>, vector<256x128xbf16>, vector<16x128xf32> -> vector<16x128xf32>
    %c0_64 = arith.constant 0 : index
    %c0_65 = arith.constant 0 : index
    %c768 = arith.constant 768 : index
    %175 = vector.load %arg5[%c0_64, %c0_65, %c768] : memref<2x1x896xf32, #tpu.memory_space<vmem>>, vector<1x1x128xf32>
    %176 = vector.shape_cast %175 : vector<1x1x128xf32> to vector<1x128xf32>
    %177 = vector.broadcast %176 : vector<1x128xf32> to vector<16x128xf32>
    %178 = arith.addf %174, %177 : vector<16x128xf32>
    %179 = arith.addf %178, %149 : vector<16x128xf32>
    %c0_66 = arith.constant 0 : index
    %c2 = arith.constant 2 : index
    %c0_67 = arith.constant 0 : index
    %180 = vector.load %arg6[%c0_66, %c2, %c0_67] : memref<2x4x128xf32, #tpu.memory_space<vmem>>, vector<1x1x128xf32>
    %181 = vector.shape_cast %180 : vector<1x1x128xf32> to vector<1x128xf32>
    %c0_68 = arith.constant 0 : index
    %c3 = arith.constant 3 : index
    %c0_69 = arith.constant 0 : index
    %182 = vector.load %arg6[%c0_68, %c3, %c0_69] : memref<2x4x128xf32, #tpu.memory_space<vmem>>, vector<1x1x128xf32>
    %183 = vector.shape_cast %182 : vector<1x1x128xf32> to vector<1x128xf32>
    %cst_70 = arith.constant dense<0.000000e+00> : vector<16xf32>
    %184 = vector.multi_reduction <add>, %179, %cst_70 [1] : vector<16x128xf32> to vector<16xf32>
    %185 = vector.shape_cast %184 : vector<16xf32> to vector<16x1xf32>
    %cst_71 = arith.constant 1.280000e+02 : f32
    %186 = vector.broadcast %cst_71 : f32 to vector<16x1xf32>
    %187 = arith.divf %185, %186 : vector<16x1xf32>
    %188 = vector.broadcast %187 : vector<16x1xf32> to vector<16x128xf32>
    %189 = arith.subf %179, %188 : vector<16x128xf32>
    %190 = arith.mulf %189, %189 : vector<16x128xf32>
    %cst_72 = arith.constant dense<0.000000e+00> : vector<16xf32>
    %191 = vector.multi_reduction <add>, %190, %cst_72 [1] : vector<16x128xf32> to vector<16xf32>
    %192 = vector.shape_cast %191 : vector<16xf32> to vector<16x1xf32>
    %cst_73 = arith.constant 1.280000e+02 : f32
    %193 = vector.broadcast %cst_73 : f32 to vector<16x1xf32>
    %194 = arith.divf %192, %193 : vector<16x1xf32>
    %195 = vector.broadcast %187 : vector<16x1xf32> to vector<16x128xf32>
    %196 = arith.subf %179, %195 : vector<16x128xf32>
    %cst_74 = arith.constant 9.99999996E-13 : f32
    %197 = vector.broadcast %cst_74 : f32 to vector<16x1xf32>
    %198 = arith.addf %194, %197 : vector<16x1xf32>
    %199 = math.rsqrt %198 : vector<16x1xf32>
    %200 = vector.broadcast %199 : vector<16x1xf32> to vector<16x128xf32>
    %201 = arith.mulf %196, %200 : vector<16x128xf32>
    %202 = vector.broadcast %181 : vector<1x128xf32> to vector<16x128xf32>
    %203 = arith.mulf %201, %202 : vector<16x128xf32>
    %204 = vector.broadcast %183 : vector<1x128xf32> to vector<16x128xf32>
    %205 = arith.addf %203, %204 : vector<16x128xf32>
    %c1_75 = arith.constant 1 : index
    %c0_76 = arith.constant 0 : index
    %c0_77 = arith.constant 0 : index
    %206 = vector.load %arg3[%c1_75, %c0_76, %c0_77] : memref<2x128x768xbf16, #tpu.memory_space<vmem>>, vector<1x128x384xbf16>
    %207 = vector.shape_cast %206 : vector<1x128x384xbf16> to vector<128x384xbf16>
    %208 = arith.truncf %205 : vector<16x128xf32> to vector<16x128xbf16>
    %cst_78 = arith.constant dense<0.000000e+00> : vector<16x384xf32>
    %209 = tpu.matmul %208, %207, %cst_78 {dimension_numbers = #tpu.dot_dimension_numbers<[1], [0], [0], [1], [0, 0, 1, 1], [], []>} : vector<16x128xbf16>, vector<128x384xbf16>, vector<16x384xf32> -> vector<16x384xf32>
    %c1_79 = arith.constant 1 : index
    %c0_80 = arith.constant 0 : index
    %c0_81 = arith.constant 0 : index
    %210 = vector.load %arg5[%c1_79, %c0_80, %c0_81] : memref<2x1x896xf32, #tpu.memory_space<vmem>>, vector<1x1x384xf32>
    %211 = vector.shape_cast %210 : vector<1x1x384xf32> to vector<1x384xf32>
    %212 = vector.broadcast %211 : vector<1x384xf32> to vector<16x384xf32>
    %213 = arith.addf %209, %212 : vector<16x384xf32>
    %214 = vector.extract_strided_slice %213 {offsets = [0, 0], sizes = [16, 32], strides = [1, 1]} : vector<16x384xf32> to vector<16x32xf32>
    %215 = arith.truncf %214 : vector<16x32xf32> to vector<16x32xbf16>
    %216 = vector.extract_strided_slice %213 {offsets = [0, 128], sizes = [16, 32], strides = [1, 1]} : vector<16x384xf32> to vector<16x32xf32>
    %217 = arith.truncf %216 : vector<16x32xf32> to vector<16x32xbf16>
    %218 = vector.extract_strided_slice %213 {offsets = [0, 256], sizes = [16, 32], strides = [1, 1]} : vector<16x384xf32> to vector<16x32xf32>
    %219 = arith.truncf %218 : vector<16x32xf32> to vector<16x32xbf16>
    %cst_82 = arith.constant dense<0.000000e+00> : vector<16x16xf32>
    %220 = tpu.matmul %215, %217, %cst_82 {dimension_numbers = #tpu.dot_dimension_numbers<[1], [1], [0], [0], [0, 0, 1, 0], [], []>} : vector<16x32xbf16>, vector<16x32xbf16>, vector<16x16xf32> -> vector<16x16xf32>
    %221 = arith.addf %220, %25 : vector<16x16xf32>
    %cst_83 = arith.constant dense<0xFF800000> : vector<16xf32>
    %222 = vector.multi_reduction <maximumf>, %221, %cst_83 [1] : vector<16x16xf32> to vector<16xf32>
    %223 = vector.shape_cast %222 : vector<16xf32> to vector<16x1xf32>
    %224 = vector.broadcast %223 : vector<16x1xf32> to vector<16x16xf32>
    %225 = arith.subf %221, %224 : vector<16x16xf32>
    %226 = math.exp %225 : vector<16x16xf32>
    %cst_84 = arith.constant dense<0.000000e+00> : vector<16xf32>
    %227 = vector.multi_reduction <add>, %226, %cst_84 [1] : vector<16x16xf32> to vector<16xf32>
    %228 = vector.shape_cast %227 : vector<16xf32> to vector<16x1xf32>
    %229 = tpu.reciprocal %228 {approx = true} : vector<16x1xf32> -> vector<16x1xf32>
    %230 = vector.broadcast %229 : vector<16x1xf32> to vector<16x16xf32>
    %231 = arith.mulf %226, %230 : vector<16x16xf32>
    %232 = arith.truncf %231 : vector<16x16xf32> to vector<16x16xbf16>
    %cst_85 = arith.constant dense<0.000000e+00> : vector<16x32xf32>
    %233 = tpu.matmul %232, %219, %cst_85 {dimension_numbers = #tpu.dot_dimension_numbers<[1], [0], [0], [1], [0, 0, 1, 1], [], []>} : vector<16x16xbf16>, vector<16x32xbf16>, vector<16x32xf32> -> vector<16x32xf32>
    %234 = vector.extract_strided_slice %213 {offsets = [0, 32], sizes = [16, 32], strides = [1, 1]} : vector<16x384xf32> to vector<16x32xf32>
    %235 = arith.truncf %234 : vector<16x32xf32> to vector<16x32xbf16>
    %236 = vector.extract_strided_slice %213 {offsets = [0, 160], sizes = [16, 32], strides = [1, 1]} : vector<16x384xf32> to vector<16x32xf32>
    %237 = arith.truncf %236 : vector<16x32xf32> to vector<16x32xbf16>
    %238 = vector.extract_strided_slice %213 {offsets = [0, 288], sizes = [16, 32], strides = [1, 1]} : vector<16x384xf32> to vector<16x32xf32>
    %239 = arith.truncf %238 : vector<16x32xf32> to vector<16x32xbf16>
    %cst_86 = arith.constant dense<0.000000e+00> : vector<16x16xf32>
    %240 = tpu.matmul %235, %237, %cst_86 {dimension_numbers = #tpu.dot_dimension_numbers<[1], [1], [0], [0], [0, 0, 1, 0], [], []>} : vector<16x32xbf16>, vector<16x32xbf16>, vector<16x16xf32> -> vector<16x16xf32>
    %241 = arith.addf %240, %25 : vector<16x16xf32>
    %cst_87 = arith.constant dense<0xFF800000> : vector<16xf32>
    %242 = vector.multi_reduction <maximumf>, %241, %cst_87 [1] : vector<16x16xf32> to vector<16xf32>
    %243 = vector.shape_cast %242 : vector<16xf32> to vector<16x1xf32>
    %244 = vector.broadcast %243 : vector<16x1xf32> to vector<16x16xf32>
    %245 = arith.subf %241, %244 : vector<16x16xf32>
    %246 = math.exp %245 : vector<16x16xf32>
    %cst_88 = arith.constant dense<0.000000e+00> : vector<16xf32>
    %247 = vector.multi_reduction <add>, %246, %cst_88 [1] : vector<16x16xf32> to vector<16xf32>
    %248 = vector.shape_cast %247 : vector<16xf32> to vector<16x1xf32>
    %249 = tpu.reciprocal %248 {approx = true} : vector<16x1xf32> -> vector<16x1xf32>
    %250 = vector.broadcast %249 : vector<16x1xf32> to vector<16x16xf32>
    %251 = arith.mulf %246, %250 : vector<16x16xf32>
    %252 = arith.truncf %251 : vector<16x16xf32> to vector<16x16xbf16>
    %cst_89 = arith.constant dense<0.000000e+00> : vector<16x32xf32>
    %253 = tpu.matmul %252, %239, %cst_89 {dimension_numbers = #tpu.dot_dimension_numbers<[1], [0], [0], [1], [0, 0, 1, 1], [], []>} : vector<16x16xbf16>, vector<16x32xbf16>, vector<16x32xf32> -> vector<16x32xf32>
    %254 = vector.extract_strided_slice %213 {offsets = [0, 64], sizes = [16, 32], strides = [1, 1]} : vector<16x384xf32> to vector<16x32xf32>
    %255 = arith.truncf %254 : vector<16x32xf32> to vector<16x32xbf16>
    %256 = vector.extract_strided_slice %213 {offsets = [0, 192], sizes = [16, 32], strides = [1, 1]} : vector<16x384xf32> to vector<16x32xf32>
    %257 = arith.truncf %256 : vector<16x32xf32> to vector<16x32xbf16>
    %258 = vector.extract_strided_slice %213 {offsets = [0, 320], sizes = [16, 32], strides = [1, 1]} : vector<16x384xf32> to vector<16x32xf32>
    %259 = arith.truncf %258 : vector<16x32xf32> to vector<16x32xbf16>
    %cst_90 = arith.constant dense<0.000000e+00> : vector<16x16xf32>
    %260 = tpu.matmul %255, %257, %cst_90 {dimension_numbers = #tpu.dot_dimension_numbers<[1], [1], [0], [0], [0, 0, 1, 0], [], []>} : vector<16x32xbf16>, vector<16x32xbf16>, vector<16x16xf32> -> vector<16x16xf32>
    %261 = arith.addf %260, %25 : vector<16x16xf32>
    %cst_91 = arith.constant dense<0xFF800000> : vector<16xf32>
    %262 = vector.multi_reduction <maximumf>, %261, %cst_91 [1] : vector<16x16xf32> to vector<16xf32>
    %263 = vector.shape_cast %262 : vector<16xf32> to vector<16x1xf32>
    %264 = vector.broadcast %263 : vector<16x1xf32> to vector<16x16xf32>
    %265 = arith.subf %261, %264 : vector<16x16xf32>
    %266 = math.exp %265 : vector<16x16xf32>
    %cst_92 = arith.constant dense<0.000000e+00> : vector<16xf32>
    %267 = vector.multi_reduction <add>, %266, %cst_92 [1] : vector<16x16xf32> to vector<16xf32>
    %268 = vector.shape_cast %267 : vector<16xf32> to vector<16x1xf32>
    %269 = tpu.reciprocal %268 {approx = true} : vector<16x1xf32> -> vector<16x1xf32>
    %270 = vector.broadcast %269 : vector<16x1xf32> to vector<16x16xf32>
    %271 = arith.mulf %266, %270 : vector<16x16xf32>
    %272 = arith.truncf %271 : vector<16x16xf32> to vector<16x16xbf16>
    %cst_93 = arith.constant dense<0.000000e+00> : vector<16x32xf32>
    %273 = tpu.matmul %272, %259, %cst_93 {dimension_numbers = #tpu.dot_dimension_numbers<[1], [0], [0], [1], [0, 0, 1, 1], [], []>} : vector<16x16xbf16>, vector<16x32xbf16>, vector<16x32xf32> -> vector<16x32xf32>
    %274 = vector.extract_strided_slice %213 {offsets = [0, 96], sizes = [16, 32], strides = [1, 1]} : vector<16x384xf32> to vector<16x32xf32>
    %275 = arith.truncf %274 : vector<16x32xf32> to vector<16x32xbf16>
    %276 = vector.extract_strided_slice %213 {offsets = [0, 224], sizes = [16, 32], strides = [1, 1]} : vector<16x384xf32> to vector<16x32xf32>
    %277 = arith.truncf %276 : vector<16x32xf32> to vector<16x32xbf16>
    %278 = vector.extract_strided_slice %213 {offsets = [0, 352], sizes = [16, 32], strides = [1, 1]} : vector<16x384xf32> to vector<16x32xf32>
    %279 = arith.truncf %278 : vector<16x32xf32> to vector<16x32xbf16>
    %cst_94 = arith.constant dense<0.000000e+00> : vector<16x16xf32>
    %280 = tpu.matmul %275, %277, %cst_94 {dimension_numbers = #tpu.dot_dimension_numbers<[1], [1], [0], [0], [0, 0, 1, 0], [], []>} : vector<16x32xbf16>, vector<16x32xbf16>, vector<16x16xf32> -> vector<16x16xf32>
    %281 = arith.addf %280, %25 : vector<16x16xf32>
    %cst_95 = arith.constant dense<0xFF800000> : vector<16xf32>
    %282 = vector.multi_reduction <maximumf>, %281, %cst_95 [1] : vector<16x16xf32> to vector<16xf32>
    %283 = vector.shape_cast %282 : vector<16xf32> to vector<16x1xf32>
    %284 = vector.broadcast %283 : vector<16x1xf32> to vector<16x16xf32>
    %285 = arith.subf %281, %284 : vector<16x16xf32>
    %286 = math.exp %285 : vector<16x16xf32>
    %cst_96 = arith.constant dense<0.000000e+00> : vector<16xf32>
    %287 = vector.multi_reduction <add>, %286, %cst_96 [1] : vector<16x16xf32> to vector<16xf32>
    %288 = vector.shape_cast %287 : vector<16xf32> to vector<16x1xf32>
    %289 = tpu.reciprocal %288 {approx = true} : vector<16x1xf32> -> vector<16x1xf32>
    %290 = vector.broadcast %289 : vector<16x1xf32> to vector<16x16xf32>
    %291 = arith.mulf %286, %290 : vector<16x16xf32>
    %292 = arith.truncf %291 : vector<16x16xf32> to vector<16x16xbf16>
    %cst_97 = arith.constant dense<0.000000e+00> : vector<16x32xf32>
    %293 = tpu.matmul %292, %279, %cst_97 {dimension_numbers = #tpu.dot_dimension_numbers<[1], [0], [0], [1], [0, 0, 1, 1], [], []>} : vector<16x16xbf16>, vector<16x32xbf16>, vector<16x32xf32> -> vector<16x32xf32>
    %294 = tpu.concatenate %233, %253, %273, %293 in 1 : vector<16x32xf32>, vector<16x32xf32>, vector<16x32xf32>, vector<16x32xf32> -> vector<16x128xf32>
    %c1_98 = arith.constant 1 : index
    %c0_99 = arith.constant 0 : index
    %c384_100 = arith.constant 384 : index
    %295 = vector.load %arg3[%c1_98, %c0_99, %c384_100] : memref<2x128x768xbf16, #tpu.memory_space<vmem>>, vector<1x128x128xbf16>
    %296 = vector.shape_cast %295 : vector<1x128x128xbf16> to vector<128x128xbf16>
    %297 = arith.truncf %294 : vector<16x128xf32> to vector<16x128xbf16>
    %cst_101 = arith.constant dense<0.000000e+00> : vector<16x128xf32>
    %298 = tpu.matmul %297, %296, %cst_101 {dimension_numbers = #tpu.dot_dimension_numbers<[1], [0], [0], [1], [0, 0, 1, 1], [], []>} : vector<16x128xbf16>, vector<128x128xbf16>, vector<16x128xf32> -> vector<16x128xf32>
    %c1_102 = arith.constant 1 : index
    %c0_103 = arith.constant 0 : index
    %c384_104 = arith.constant 384 : index
    %299 = vector.load %arg5[%c1_102, %c0_103, %c384_104] : memref<2x1x896xf32, #tpu.memory_space<vmem>>, vector<1x1x128xf32>
    %300 = vector.shape_cast %299 : vector<1x1x128xf32> to vector<1x128xf32>
    %301 = vector.broadcast %300 : vector<1x128xf32> to vector<16x128xf32>
    %302 = arith.addf %298, %301 : vector<16x128xf32>
    %303 = arith.addf %302, %205 : vector<16x128xf32>
    %c1_105 = arith.constant 1 : index
    %c0_106 = arith.constant 0 : index
    %c0_107 = arith.constant 0 : index
    %304 = vector.load %arg6[%c1_105, %c0_106, %c0_107] : memref<2x4x128xf32, #tpu.memory_space<vmem>>, vector<1x1x128xf32>
    %305 = vector.shape_cast %304 : vector<1x1x128xf32> to vector<1x128xf32>
    %c1_108 = arith.constant 1 : index
    %c1_109 = arith.constant 1 : index
    %c0_110 = arith.constant 0 : index
    %306 = vector.load %arg6[%c1_108, %c1_109, %c0_110] : memref<2x4x128xf32, #tpu.memory_space<vmem>>, vector<1x1x128xf32>
    %307 = vector.shape_cast %306 : vector<1x1x128xf32> to vector<1x128xf32>
    %cst_111 = arith.constant dense<0.000000e+00> : vector<16xf32>
    %308 = vector.multi_reduction <add>, %303, %cst_111 [1] : vector<16x128xf32> to vector<16xf32>
    %309 = vector.shape_cast %308 : vector<16xf32> to vector<16x1xf32>
    %cst_112 = arith.constant 1.280000e+02 : f32
    %310 = vector.broadcast %cst_112 : f32 to vector<16x1xf32>
    %311 = arith.divf %309, %310 : vector<16x1xf32>
    %312 = vector.broadcast %311 : vector<16x1xf32> to vector<16x128xf32>
    %313 = arith.subf %303, %312 : vector<16x128xf32>
    %314 = arith.mulf %313, %313 : vector<16x128xf32>
    %cst_113 = arith.constant dense<0.000000e+00> : vector<16xf32>
    %315 = vector.multi_reduction <add>, %314, %cst_113 [1] : vector<16x128xf32> to vector<16xf32>
    %316 = vector.shape_cast %315 : vector<16xf32> to vector<16x1xf32>
    %cst_114 = arith.constant 1.280000e+02 : f32
    %317 = vector.broadcast %cst_114 : f32 to vector<16x1xf32>
    %318 = arith.divf %316, %317 : vector<16x1xf32>
    %319 = vector.broadcast %311 : vector<16x1xf32> to vector<16x128xf32>
    %320 = arith.subf %303, %319 : vector<16x128xf32>
    %cst_115 = arith.constant 9.99999996E-13 : f32
    %321 = vector.broadcast %cst_115 : f32 to vector<16x1xf32>
    %322 = arith.addf %318, %321 : vector<16x1xf32>
    %323 = math.rsqrt %322 : vector<16x1xf32>
    %324 = vector.broadcast %323 : vector<16x1xf32> to vector<16x128xf32>
    %325 = arith.mulf %320, %324 : vector<16x128xf32>
    %326 = vector.broadcast %305 : vector<1x128xf32> to vector<16x128xf32>
    %327 = arith.mulf %325, %326 : vector<16x128xf32>
    %328 = vector.broadcast %307 : vector<1x128xf32> to vector<16x128xf32>
    %329 = arith.addf %327, %328 : vector<16x128xf32>
    %c1_116 = arith.constant 1 : index
    %c0_117 = arith.constant 0 : index
    %c512_118 = arith.constant 512 : index
    %330 = vector.load %arg3[%c1_116, %c0_117, %c512_118] : memref<2x128x768xbf16, #tpu.memory_space<vmem>>, vector<1x128x256xbf16>
    %331 = vector.shape_cast %330 : vector<1x128x256xbf16> to vector<128x256xbf16>
    %332 = arith.truncf %329 : vector<16x128xf32> to vector<16x128xbf16>
    %cst_119 = arith.constant dense<0.000000e+00> : vector<16x256xf32>
    %333 = tpu.matmul %332, %331, %cst_119 {dimension_numbers = #tpu.dot_dimension_numbers<[1], [0], [0], [1], [0, 0, 1, 1], [], []>} : vector<16x128xbf16>, vector<128x256xbf16>, vector<16x256xf32> -> vector<16x256xf32>
    %c1_120 = arith.constant 1 : index
    %c0_121 = arith.constant 0 : index
    %c512_122 = arith.constant 512 : index
    %334 = vector.load %arg5[%c1_120, %c0_121, %c512_122] : memref<2x1x896xf32, #tpu.memory_space<vmem>>, vector<1x1x256xf32>
    %335 = vector.shape_cast %334 : vector<1x1x256xf32> to vector<1x256xf32>
    %336 = vector.broadcast %335 : vector<1x256xf32> to vector<16x256xf32>
    %337 = arith.addf %333, %336 : vector<16x256xf32>
    %cst_123 = arith.constant 5.000000e-01 : f32
    %338 = vector.broadcast %cst_123 : f32 to vector<16x256xf32>
    %339 = arith.mulf %338, %337 : vector<16x256xf32>
    %cst_124 = arith.constant 4.471500e-02 : f32
    %340 = vector.broadcast %cst_124 : f32 to vector<16x256xf32>
    %341 = arith.mulf %340, %337 : vector<16x256xf32>
    %342 = arith.mulf %341, %337 : vector<16x256xf32>
    %343 = arith.mulf %342, %337 : vector<16x256xf32>
    %344 = arith.addf %337, %343 : vector<16x256xf32>
    %cst_125 = arith.constant 0.797884583 : f32
    %345 = vector.broadcast %cst_125 : f32 to vector<16x256xf32>
    %346 = arith.mulf %345, %344 : vector<16x256xf32>
    %347 = math.tanh %346 : vector<16x256xf32>
    %cst_126 = arith.constant 1.000000e+00 : f32
    %348 = vector.broadcast %cst_126 : f32 to vector<16x256xf32>
    %349 = arith.addf %348, %347 : vector<16x256xf32>
    %350 = arith.mulf %339, %349 : vector<16x256xf32>
    %c1_127 = arith.constant 1 : index
    %c0_128 = arith.constant 0 : index
    %c0_129 = arith.constant 0 : index
    %351 = vector.load %arg4[%c1_127, %c0_128, %c0_129] : memref<2x256x128xbf16, #tpu.memory_space<vmem>>, vector<1x256x128xbf16>
    %352 = vector.shape_cast %351 : vector<1x256x128xbf16> to vector<256x128xbf16>
    %353 = arith.truncf %350 : vector<16x256xf32> to vector<16x256xbf16>
    %cst_130 = arith.constant dense<0.000000e+00> : vector<16x128xf32>
    %354 = tpu.matmul %353, %352, %cst_130 {dimension_numbers = #tpu.dot_dimension_numbers<[1], [0], [0], [1], [0, 0, 1, 1], [], []>} : vector<16x256xbf16>, vector<256x128xbf16>, vector<16x128xf32> -> vector<16x128xf32>
    %c1_131 = arith.constant 1 : index
    %c0_132 = arith.constant 0 : index
    %c768_133 = arith.constant 768 : index
    %355 = vector.load %arg5[%c1_131, %c0_132, %c768_133] : memref<2x1x896xf32, #tpu.memory_space<vmem>>, vector<1x1x128xf32>
    %356 = vector.shape_cast %355 : vector<1x1x128xf32> to vector<1x128xf32>
    %357 = vector.broadcast %356 : vector<1x128xf32> to vector<16x128xf32>
    %358 = arith.addf %354, %357 : vector<16x128xf32>
    %359 = arith.addf %358, %329 : vector<16x128xf32>
    %c1_134 = arith.constant 1 : index
    %c2_135 = arith.constant 2 : index
    %c0_136 = arith.constant 0 : index
    %360 = vector.load %arg6[%c1_134, %c2_135, %c0_136] : memref<2x4x128xf32, #tpu.memory_space<vmem>>, vector<1x1x128xf32>
    %361 = vector.shape_cast %360 : vector<1x1x128xf32> to vector<1x128xf32>
    %c1_137 = arith.constant 1 : index
    %c3_138 = arith.constant 3 : index
    %c0_139 = arith.constant 0 : index
    %362 = vector.load %arg6[%c1_137, %c3_138, %c0_139] : memref<2x4x128xf32, #tpu.memory_space<vmem>>, vector<1x1x128xf32>
    %363 = vector.shape_cast %362 : vector<1x1x128xf32> to vector<1x128xf32>
    %cst_140 = arith.constant dense<0.000000e+00> : vector<16xf32>
    %364 = vector.multi_reduction <add>, %359, %cst_140 [1] : vector<16x128xf32> to vector<16xf32>
    %365 = vector.shape_cast %364 : vector<16xf32> to vector<16x1xf32>
    %cst_141 = arith.constant 1.280000e+02 : f32
    %366 = vector.broadcast %cst_141 : f32 to vector<16x1xf32>
    %367 = arith.divf %365, %366 : vector<16x1xf32>
    %368 = vector.broadcast %367 : vector<16x1xf32> to vector<16x128xf32>
    %369 = arith.subf %359, %368 : vector<16x128xf32>
    %370 = arith.mulf %369, %369 : vector<16x128xf32>
    %cst_142 = arith.constant dense<0.000000e+00> : vector<16xf32>
    %371 = vector.multi_reduction <add>, %370, %cst_142 [1] : vector<16x128xf32> to vector<16xf32>
    %372 = vector.shape_cast %371 : vector<16xf32> to vector<16x1xf32>
    %cst_143 = arith.constant 1.280000e+02 : f32
    %373 = vector.broadcast %cst_143 : f32 to vector<16x1xf32>
    %374 = arith.divf %372, %373 : vector<16x1xf32>
    %375 = vector.broadcast %367 : vector<16x1xf32> to vector<16x128xf32>
    %376 = arith.subf %359, %375 : vector<16x128xf32>
    %cst_144 = arith.constant 9.99999996E-13 : f32
    %377 = vector.broadcast %cst_144 : f32 to vector<16x1xf32>
    %378 = arith.addf %374, %377 : vector<16x1xf32>
    %379 = math.rsqrt %378 : vector<16x1xf32>
    %380 = vector.broadcast %379 : vector<16x1xf32> to vector<16x128xf32>
    %381 = arith.mulf %376, %380 : vector<16x128xf32>
    %382 = vector.broadcast %361 : vector<1x128xf32> to vector<16x128xf32>
    %383 = arith.mulf %381, %382 : vector<16x128xf32>
    %384 = vector.broadcast %363 : vector<1x128xf32> to vector<16x128xf32>
    %385 = arith.addf %383, %384 : vector<16x128xf32>
    %c0_145 = arith.constant 0 : index
    %c0_146 = arith.constant 0 : index
    %386 = vector.load %arg7[%c0_145, %c0_146] : memref<128x128xbf16, #tpu.memory_space<vmem>>, vector<128x128xbf16>
    %387 = arith.truncf %385 : vector<16x128xf32> to vector<16x128xbf16>
    %cst_147 = arith.constant dense<0.000000e+00> : vector<16x128xf32>
    %388 = tpu.matmul %387, %386, %cst_147 {dimension_numbers = #tpu.dot_dimension_numbers<[1], [0], [0], [1], [0, 0, 1, 1], [], []>} : vector<16x128xbf16>, vector<128x128xbf16>, vector<16x128xf32> -> vector<16x128xf32>
    %c0_148 = arith.constant 0 : index
    %c0_149 = arith.constant 0 : index
    %389 = vector.load %arg8[%c0_148, %c0_149] : memref<1x128xf32, #tpu.memory_space<vmem>>, vector<1x128xf32>
    %390 = vector.broadcast %389 : vector<1x128xf32> to vector<16x128xf32>
    %391 = arith.addf %388, %390 : vector<16x128xf32>
    %c0_150 = arith.constant 0 : index
    %c0_151 = arith.constant 0 : index
    %392 = vector.load %arg9[%c0_150, %c0_151] : memref<16x128xf32, #tpu.memory_space<vmem>>, vector<16x128xf32>
    tpu.vector_store %arg9[%c0_150, %c0_151], %391 {strides = array<i32>} : memref<16x128xf32, #tpu.memory_space<vmem>>, vector<16x128xf32>,
    return
  }
}

</mosaic_0001>

<bundles_post_ra>
// kernel: mimic_predictor_forward.1
= control target key start
LH: loop header
LB: loop body
LE: loop exit
PB: predicated region body
PF: predicated region fallthrough
CT: control target
= control target key end

     0   :  { %14 = vsyncpa [#allocation3], 0  ;;  %s4347_s0 = inlined_call_operand.vmem [shape: f32[16,128], index: 0, kind: input, shape index: {}]   ;;  %s4348_s1 = inlined_call_operand.vmem [shape: f32[16,16], index: 1, kind: input, shape index: {}]   ;;  %s4349_s2 = inlined_call_operand.vmem [shape: f32[2,128], index: 2, kind: input, shape index: {}]   ;;  %s4350_s3 = inlined_call_operand.hbm [shape: bf16[2,128,768], index: 3, kind: input, shape index: {}]   ;;  %s4351_s4 = inlined_call_operand.vmem [shape: bf16[2,256,128], index: 4, kind: input, shape index: {}]   ;;  %s4352_s5 = inlined_call_operand.hbm [shape: f32[2,1,896], index: 5, kind: input, shape index: {}]   ;;  %s4353_s6 = inlined_call_operand.hbm [shape: f32[2,4,128], index: 6, kind: input, shape index: {}]   ;;  %s4354_s7 = inlined_call_operand.hbm [shape: bf16[128,128], index: 7, kind: input, shape index: {}]   ;;  %s4355_s8 = inlined_call_operand.vmem [shape: f32[1,128], index: 8, kind: input, shape index: {}]   ;;  %s4356_s9 = inlined_call_operand.vmem [shape: f32[16,128], index: 9, kind: output, shape index: {}]  }
   0x1   :  { %15 = vsyncpa [#allocation5], 0 }
   0x2   :  { %16 = vsyncpa [#allocation8], 0  ;;  %s3836_s30 = smov [#allocation4]  }
   0x3   :  { %s42_s10 = sshll.u32 %s3836_s30, 4  ;;  %s43_s10 = int_to_ptr.vmem [resolvable:$true] %s42_s10 }
   0x4   :  { %s3758_s11 = scalar_lea.vmem %s43_s10, 224  ;;  %p3763_p1 = scmp.lt.s32.totalorder %s43_s10, %s43_s10 }
   0x5   :  { %p3759_p0 = scmp.ne.s32.totalorder %s43_s10, %s3758_s11  ;;  %p3764_p2 = scmp.lt.s32.totalorder %s3758_s11, %s3758_s11 }
   0x7   :  { %p3765_p3 = por %p3764_p2, %p3763_p1 }
   0x9   :  { %p3766_p4 = pnand %p3765_p3, %p3759_p0 }
   0xb   :  { %3769 = shalt.err (!%p3766_p4)
}
   0xc   :  { %s3837_s12 = smov 112   ;;  %s3838_s13 = smov 7  }
   0xd   :  { %48 = dma.hbm_to_vmem [thread:$0]  %s4352_s5, 224, %s43_s10, [#allocation5], %s3837_s12, %s3837_s12, %s3838_s13  }
   0xe   :  { %s3839_s16 = smov [#allocation2]  }
   0xf   :  { %s28_s17 = sshll.u32 %s3839_s16, 4  ;;  %s29_s17 = int_to_ptr.vmem [resolvable:$true] %s28_s17 }
  0x10   :  { %s3778_s18 = scalar_lea.vmem %s29_s17, 12288  ;;  %p3783_p6 = scmp.lt.s32.totalorder %s29_s17, %s29_s17 }
  0x11   :  { %p3779_p5 = scmp.ne.s32.totalorder %s29_s17, %s3778_s18  ;;  %p3784_p7 = scmp.lt.s32.totalorder %s3778_s18, %s3778_s18 }
  0x13   :  { %p3785_p8 = por %p3784_p7, %p3783_p6 }
  0x15   :  { %p3786_p9 = pnand %p3785_p8, %p3779_p5 }
  0x17   :  { %3789 = shalt.err (!%p3786_p9)
}
  0x18   :  { %s3840_s19 = smov 384   ;;  %s3841_s20 = smov 24  }
  0x19   :  { %34 = dma.hbm_to_vmem [thread:$0]  %s4350_s3, 12288, %s29_s17, [#allocation3], %s3840_s19, %s3840_s19, %s3841_s20  }
  0x1a   :  { %s3842_s23 = smov [#allocation6]  }
  0x1b   :  { %s54_s24 = sshll.u32 %s3842_s23, 4  ;;  %s55_s24 = int_to_ptr.vmem [resolvable:$true] %s54_s24 }
  0x1c   :  { %s3798_s5 = scalar_lea.vmem %s55_s24, 128  ;;  %p3803_p11 = scmp.lt.s32.totalorder %s55_s24, %s55_s24 }
  0x1d   :  { %p3799_p10 = scmp.ne.s32.totalorder %s55_s24, %s3798_s5  ;;  %p3804_p12 = scmp.lt.s32.totalorder %s3798_s5, %s3798_s5 }
  0x1f   :  { %p3805_p13 = por %p3804_p12, %p3803_p11 }
  0x21   :  { %p3806_p0 = pnand %p3805_p13, %p3799_p10 }
  0x23   :  { %3809 = shalt.err (!%p3806_p0)
}
  0x24   :  { %s3843_s25 = smov 64   ;;  %s3844_s26 = smov 4  }
  0x25   :  { %60 = dma.hbm_to_vmem [thread:$0]  %s4353_s6, 128, %s55_s24, [#allocation5], %s3843_s25, %s3843_s25, %s3844_s26  }
  0x26   :  { %s3845_s29 = smov [#allocation7]  }
  0x27   :  { %s66_s3 = sshll.u32 %s3845_s29, 4  ;;  %s67_s3 = int_to_ptr.vmem [resolvable:$true] %s66_s3 }
  0x28   :  { %s3818_s30 = scalar_lea.vmem %s67_s3, 1024  ;;  %p3823_p2 = scmp.lt.s32.totalorder %s67_s3, %s67_s3 }
  0x29   :  { %p3819_p1 = scmp.ne.s32.totalorder %s67_s3, %s3818_s30  ;;  %p3824_p3 = scmp.lt.s32.totalorder %s3818_s30, %s3818_s30 }
  0x2b   :  { %p3825_p4 = por %p3824_p3, %p3823_p2 }
  0x2d   :  { %p3826_p5 = pnand %p3825_p4, %p3819_p1 }
  0x2f   :  { %3829 = shalt.err (!%p3826_p5)
}
  0x30   :  { %72 = dma.hbm_to_vmem [thread:$0]  %s4354_s7, 1024, %s67_s3, [#allocation8], %s3843_s25, %s3843_s25, %s3844_s26  }
  0x31   :  { %3830 = dma.done.wait [#allocation3], 12288  }
  0x32   :  { %3831 = vsyncadd [#allocation3], 4294955008 }
  0x33   :  { %3832 = dma.done.wait [#allocation5], 352  }
  0x34   :  { %3833 = vsyncadd [#allocation5], 4294966944 }
  0x35   :  { %3834 = dma.done.wait [#allocation8], 1024  }
  0x36   :  { %3835 = vsyncadd [#allocation8], 4294966272  ;;  %v88_v0 = vld [vmem:[%s4347_s0] sm:$0xff]  ;;  %v89_v1 = vld [vmem:[%s4347_s0 + $0x8] sm:$0xff]  ;;  %v3846_v4 = vmov 0.0   ;;  %v3847_v27 = vmov 0   ;;  %v164_v53 = vlaneseq }
  0x37   :  { %92 = vadd.xlane.f32.xlu0 %v88_v0  ;;  %v3480_v2 = vld [vmem:[#allocation2 + $0x154] ss:$24 sps:$4 sm:$0xff]   ;;  %v3482_v3 = vld [vmem:[#allocation2 + $0x150] ss:$24 sps:$4 sm:$0xff]   ;;  %3239 = vmatprep.subr.bf16.mxu1 %v3846_v4  ;;  %v3484_v14 = vld [vmem:[#allocation2 + $0x124] ss:$24 sps:$4 sm:$0xff]  }
  0x38   :  { %v3483_v5 = vld [vmem:[#allocation2 + $0x158] ss:$24 sps:$4 sm:$0xff]   ;;  %307 = vmatprep.subr.bf16.mxu0 %v3480_v2  ;;  %v3487_v16 = vld [vmem:[#allocation2 + $0x128] ss:$24 sps:$4 sm:$0xff]   ;;  %v3488_v17 = vld [vmem:[#allocation2 + $0xf4] ss:$24 sps:$4 sm:$0xff]   ;;  %339 = vmatprep.mubr.bf16.mxu0 %v3847_v27 }
  0x39   :  { %308 = vmatpush1.bf16.msra.mxu0 %v3482_v3  ;;  %3240 = vmatpush3.bf16.msra.mxu1 %v3483_v5  ;;  %v3486_v15 = vld [vmem:[#allocation2 + $0x120] ss:$24 sps:$4 sm:$0xff]   ;;  %v3490_v18 = vld [vmem:[#allocation2 + $0xf0] ss:$24 sps:$4 sm:$0xff]   ;;  %v3492_v20 = vld [vmem:[#allocation2 + $0xc4] ss:$24 sps:$4 sm:$0xff]  }
  0x3a   :  { %3241 = vmatprep.subr.bf16.mxu1 %v3846_v4  ;;  %309 = vmatprep.subr.bf16.mxu0 %v3484_v14  ;;  %v3491_v19 = vld [vmem:[#allocation2 + $0xf8] ss:$24 sps:$4 sm:$0xff]   ;;  %v3495_v22 = vld [vmem:[#allocation2 + $0xc8] ss:$24 sps:$4 sm:$0xff]   ;;  %v3496_v23 = vld [vmem:[#allocation2 + $0x94] ss:$24 sps:$4 sm:$0xff]  }
  0x3b   :  { %94 = vadd.xlane.f32.xlu0 %v89_v1  ;;  %v3494_v21 = vld [vmem:[#allocation2 + $0xc0] ss:$24 sps:$4 sm:$0xff]   ;;  %v3498_v24 = vld [vmem:[#allocation2 + $0x90] ss:$24 sps:$4 sm:$0xff]   ;;  %v3500_v26 = vld [vmem:[#allocation2 + $0x64] ss:$24 sps:$4 sm:$0xff]  }
  0x3c   :  { %v3499_v25 = vld [vmem:[#allocation2 + $0x98] ss:$24 sps:$4 sm:$0xff]   ;;  %vm3848_vm0 = vmmov 0   ;;  %v3503_v29 = vld [vmem:[#allocation2 + $0x68] ss:$24 sps:$4 sm:$0xff]   ;;  %v3962_v54 = vshrl.u32 %v164_v53, 7 }
  0x3d   :  { %310 = vmatpush1.bf16.msra.mxu0 %v3486_v15  ;;  %3242 = vmatpush3.bf16.msra.mxu1 %v3487_v16  ;;  %v3502_v28 = vld [vmem:[#allocation2 + $0x60] ss:$24 sps:$4 sm:$0xff]   ;;  %v3504_v30 = vld [vmem:[#allocation2 + $0x34] ss:$24 sps:$4 sm:$0xff]   ;;  %v3506_v31 = vld [vmem:[#allocation2 + $0x30] ss:$24 sps:$4 sm:$0xff]  }
  0x3e   :  { %3243 = vmatprep.subr.bf16.mxu1 %v3846_v4  ;;  %311 = vmatprep.subr.bf16.mxu0 %v3488_v17  ;;  %v3507_v32 = vld [vmem:[#allocation2 + $0x38] ss:$24 sps:$4 sm:$0xff]   ;;  %v3508_v33 = vld [vmem:[#allocation2 + $0x4] ss:$24 sps:$4 sm:$0xff]   ;;  %v3511_v35 = vld [vmem:[#allocation2 + $0x8] ss:$24 sps:$4 sm:$0xff]  }
  0x3f   :  { %3255 = vmatprep.mubr.msk.bf16.mxu1 %vm3848_vm0, %v3846_v4  ;;  %v3510_v34 = vld [vmem:[#allocation2] ss:$24 sps:$4 sm:$0xff]   ;;  %v3965_v55 = vsub.s32 0, %v3962_v54  ;;  %v174_v56 = vsub.s32 2, %v3962_v54  ;;  %v3969_v58 = vsub.s32 1, %v3962_v54  ;;  %vm394_vm1 = vcmask 261120  }
  0x40   :  { %v2919_v44 = vld [vmem:[%s4349_s2] ss:$0 sm:$0xff]  ;;  %v2920_v48 = vld [vmem:[%s4349_s2 + $0x1] ss:$0 sm:$0xff]  ;;  %s3849_s2 = smov 96   ;;  %s3850_s17 = smov 32  }
  0x41   :  { %312 = vmatpush1.bf16.msra.mxu0 %v3490_v18  ;;  %3244 = vmatpush3.bf16.msra.mxu1 %v3491_v19  ;;  %v162_v57 = vld [vmem:[#allocation4] sm:$0x7]  ;;  %vm442_vm2 = vcmask 130048   ;;  %vm902_vm3 = vcmask 523264   ;;  %vm905_vm4 = vcmask 785408  }
  0x42   :  { %3245 = vmatprep.subr.bf16.mxu1 %v3846_v4  ;;  %313 = vmatprep.subr.bf16.mxu0 %v3492_v20  ;;  %v167_v61 = vrot.slane %v162_v57, %v3965_v55  ;;  %v175_v62 = vrot.slane %v162_v57, %v174_v56 }
  0x45   :  { %314 = vmatpush1.bf16.msra.mxu0 %v3494_v21  ;;  %3246 = vmatpush3.bf16.msra.mxu1 %v3495_v22 }
  0x46   :  { %315 = vmatprep.subr.bf16.mxu0 %v3496_v23  ;;  %3247 = vmatprep.subr.bf16.mxu1 %v3846_v4 }
  0x49   :  { %316 = vmatpush1.bf16.msra.mxu0 %v3498_v24  ;;  %3248 = vmatpush3.bf16.msra.mxu1 %v3499_v25 }
  0x4a   :  { %317 = vmatprep.subr.bf16.mxu0 %v3500_v26  ;;  %3249 = vmatprep.subr.bf16.mxu1 %v3846_v4  ;;  %v127_v26 = vld [vmem:[%s4348_s1] sm:$0xff] }
  0x4d   :  { %318 = vmatpush1.bf16.msra.mxu0 %v3502_v28  ;;  %3250 = vmatpush3.bf16.msra.mxu1 %v3503_v29 }
  0x4e   :  { %319 = vmatprep.subr.bf16.mxu0 %v3504_v30  ;;  %3251 = vmatprep.subr.bf16.mxu1 %v3846_v4 }
  0x51   :  { %320 = vmatpush1.bf16.msra.mxu0 %v3506_v31  ;;  %3252 = vmatpush3.bf16.msra.mxu1 %v3507_v32  ;;  %v128_v31 = vld [vmem:[%s4348_s1 + $0x8] sm:$0xff] }
  0x52   :  { %321 = vmatprep.subr.bf16.mxu0 %v3508_v33  ;;  %3253 = vmatprep.subr.bf16.mxu1 %v3846_v4 }
  0x55   :  { %322 = vmatpush1.bf16.msra.mxu0 %v3510_v34  ;;  %3254 = vmatpush3.bf16.msra.mxu1 %v3511_v35 }
  0x56   :  { %3265 = vmatprep.subr.bf16.mxu1 %v3846_v4  ;;  %3259 = vmatprep.subr.bf16.mxu0 %v3846_v4 }
  0xc0   :  { %v93_v6 = vpop.xlane.xlu0 %92 }
  0xc1   :  { %v97_v7 = vmul.f32 0.0078125, %v93_v6 }
  0xc3   :  { %v3925_v8 = vsub.f32 %v88_v0, %v97_v7 }
  0xc4   :  { %v95_v9 = vpop.xlane.xlu0 %94 }
  0xc5   :  { %v98_v10 = vmul.f32 0.0078125, %v95_v9  ;;  %v101_v11 = vmul.f32 %v3925_v8, %v3925_v8 }
  0xc7   :  { %v3929_v12 = vsub.f32 %v89_v1, %v98_v10  ;;  %103 = vadd.xlane.f32.xlu1 %v101_v11  ;;  %v171_v1 = vrot.slane %v162_v57, %v3969_v58 }
  0xc9   :  { %v102_v13 = vmul.f32 %v3929_v12, %v3929_v12 }
  0xcb   :  { %105 = vadd.xlane.f32.xlu1 %v102_v13 }
 0x150   :  { %v104_v36 = vpop.xlane.xlu1 %103 }
 0x151   :  { %v107_v37 = vmul.f32 0.0078125, %v104_v36 }
 0x153   :  { %v109_v38 = vadd.f32 1e-12, %v107_v37 }
 0x154   :  { %v106_v39 = vpop.xlane.xlu1 %105 }
 0x155   :  { %3648 = vrsqrt.f32 %v109_v38  ;;  %v108_v40 = vmul.f32 0.0078125, %v106_v39 }
 0x157   :  { %v110_v41 = vadd.f32 1e-12, %v108_v40 }
 0x159   :  { %3650 = vrsqrt.f32 %v110_v41 }
 0x162   :  { %v3649_v42 = vpop.eup %3648 }
 0x163   :  { %v113_v43 = vmul.f32 %v3649_v42, %v3925_v8 }
 0x165   :  { %v119_v47 = vmul.f32 %v2919_v44, %v113_v43 }
 0x166   :  { %v3651_v45 = vpop.eup %3650 }
 0x167   :  { %v114_v46 = vmul.f32 %v3651_v45, %v3929_v12  ;;  %v3952_v50 = vadd.f32 %v2920_v48, %v119_v47 }
 0x169   :  { %v120_v49 = vmul.f32 %v2919_v44, %v114_v46 }
 0x16b   :  { %v3954_v51 = vadd.f32 %v2920_v48, %v120_v49 }
 0x16d   :  { %v161_v52 = vpack.c.bf16 %v3954_v51, %v3952_v50 }
 0x16f   :  { %340 = vmatmul.mubr.bf16.vlgmr.msra.gmra.mxu0 %v161_v52  ;;  %3256 = vmatmul.mubr.bf16.vlgmr.msra.gmra.mxu1 %v161_v52 }
 0x170   :  { %3261 = vmatprep.mubr.msk.bf16.mxu0 %vm3848_vm0, %v3846_v4  ;;  %3267 = vmatprep.mubr.msk.bf16.mxu1 %vm3848_vm0, %v3846_v4 }
 0x22f   :  { %v341_v59 = vpop.f32.mrf.mxu0  ;;  %v384_v60 = vpop.f32.mrf.mxu1 }
 0x230   :  { %v342_v5 = vadd.f32 %v341_v59, %v167_v61  ;;  %v385_v6 = vadd.f32 %v384_v60, %v175_v62 }
 0x231   :  { %v343_v63 = vpop.f32.mrf.mxu0  ;;  %v3257_v0 = vpop.f32.mrf.mxu1 }
 0x232   :  { %v344_v11 = vadd.f32 %v343_v63, %v171_v1 }
 0x233   :  { %v345_v2 = vpop.f32.mrf.mxu0  ;;  %v387_v3 = vpop.f32.mrf.mxu1 }
 0x234   :  { %v346_v7 = vadd.f32 %v345_v2, %v167_v61  ;;  %v388_v8 = vadd.f32 %v387_v3, %v175_v62 }
 0x235   :  { %v347_v9 = vpop.f32.mrf.mxu0  ;;  %v3258_v10 = vpop.f32.mrf.mxu1 }
 0x236   :  { %v391_v12 = vpack.c.bf16 %v346_v7, %v342_v5  ;;  %v3975_v13 = vpack.c.bf16 %v388_v8, %v385_v6  ;;  %v348_v14 = vadd.f32 %v347_v9, %v171_v1 }
 0x238   :  { %v392_v15 = vpack.c.bf16 %v348_v14, %v344_v11  ;;  %3266 = vmatpush3.bf16.msra.mxu1 %v3975_v13  ;;  %511 = vrot.lane.b32.xlu1 %v391_v12, %s3849_s2 }
 0x239   :  { %3277 = vmatprep.subr.bf16.mxu1 %v3846_v4 }
 0x23a   :  { %514 = vrot.lane.b32.xlu0 %v392_v15, %s3849_s2  ;;  %v399_v16 = vsel %vm394_vm1, %v392_v15, 0 }
 0x23b   :  { %3260 = vmatpush3.bf16.xpose.msra.mxu0 %v399_v16 }
 0x23c   :  { %636 = vrot.lane.b32.xlu1 %v392_v15, %s3843_s25  ;;  %3271 = vmatprep.subr.bf16.mxu0 %v3846_v4 }
 0x23e   :  { %757 = vrot.lane.b32.xlu0 %v392_v15, %s3850_s17 }
 0x240   :  { %634 = vrot.lane.b32.xlu1 %v391_v12, %s3843_s25 }
 0x242   :  { %3262 = vmatmul.mubr.msk.bf16.vlgmr.msra.gmra.mxu0 %vm394_vm1, %v391_v12 }
 0x243   :  { %3273 = vmatprep.mubr.msk.bf16.mxu0 %vm3848_vm0, %v3846_v4 }
 0x244   :  { %755 = vrot.lane.b32.xlu1 %v391_v12, %s3850_s17 }
 0x2aa   :  { %v512_v17 = vpop.permute.xlu1 %511 }
 0x2ac   :  { %v515_v18 = vpop.permute.xlu0 %514 }
 0x2ad   :  { %v520_v19 = vsel %vm394_vm1, %v515_v18, 0 }
 0x2ae   :  { %3272 = vmatpush3.bf16.xpose.msra.mxu0 %v520_v19  ;;  %v637_v20 = vpop.permute.xlu1 %636 }
 0x2af   :  { %3283 = vmatprep.subr.bf16.mxu0 %v3846_v4  ;;  %v642_v21 = vsel %vm394_vm1, %v637_v20, 0 }
 0x2b0   :  { %v758_v22 = vpop.permute.xlu0 %757 }
 0x2b1   :  { %v763_v24 = vsel %vm394_vm1, %v758_v22, 0 }
 0x2b2   :  { %v635_v23 = vpop.permute.xlu1 %634 }
 0x2b5   :  { %3274 = vmatmul.mubr.msk.bf16.vlgmr.msra.gmra.mxu0 %vm394_vm1, %v512_v17 }
 0x2b6   :  { %3284 = vmatpush3.bf16.xpose.msra.mxu0 %v642_v21  ;;  %3285 = vmatprep.mubr.msk.bf16.mxu0 %vm3848_vm0, %v3846_v4  ;;  %v756_v25 = vpop.permute.xlu1 %755 }
 0x2b7   :  { %3295 = vmatprep.subr.bf16.mxu0 %v3846_v4 }
 0x2bd   :  { %3286 = vmatmul.mubr.msk.bf16.vlgmr.msra.gmra.mxu0 %vm394_vm1, %v635_v23 }
 0x2be   :  { %3296 = vmatpush3.bf16.xpose.msra.mxu0 %v763_v24  ;;  %3297 = vmatprep.mubr.msk.bf16.mxu0 %vm3848_vm0, %v3846_v4 }
 0x2bf   :  { %3307 = vmatprep.subr.bf16.mxu0 %v3846_v4 }
 0x2c5   :  { %3298 = vmatmul.mubr.msk.bf16.vlgmr.msra.gmra.mxu0 %vm394_vm1, %v756_v25 }
 0x2c6   :  { %3323 = vmatprep.mubr.msk.bf16.mxu0 %vm3848_vm0, %v3846_v4 }
 0x302   :  { %v435_v28 = vpop.f32.mrf.mxu0 }
 0x303   :  { %v436_v29 = vadd.f32 %v435_v28, %v127_v26 }
 0x304   :  { %v3263_v30 = vpop.f32.mrf.mxu0 }
 0x305   :  { %v443_v32 = vsel %vm442_vm2, %v436_v29, -inf }
 0x306   :  { %444 = vmax.xlane.f32.xlu0 %v443_v32  ;;  %v438_v33 = vpop.f32.mrf.mxu0 }
 0x307   :  { %v439_v34 = vadd.f32 %v438_v33, %v128_v31 }
 0x308   :  { %v3264_v35 = vpop.f32.mrf.mxu0 }
 0x309   :  { %v446_v36 = vsel %vm442_vm2, %v439_v34, -inf }
 0x30a   :  { %447 = vmax.xlane.f32.xlu1 %v446_v36 }
 0x375   :  { %v556_v37 = vpop.f32.mrf.mxu0 }
 0x376   :  { %v557_v38 = vadd.f32 %v556_v37, %v127_v26 }
 0x377   :  { %v3275_v39 = vpop.f32.mrf.mxu0 }
 0x378   :  { %v563_v40 = vsel %vm442_vm2, %v557_v38, -inf }
 0x379   :  { %564 = vmax.xlane.f32.xlu0 %v563_v40  ;;  %v559_v41 = vpop.f32.mrf.mxu0 }
 0x37a   :  { %v560_v42 = vadd.f32 %v559_v41, %v128_v31 }
 0x37b   :  { %v3276_v43 = vpop.f32.mrf.mxu0 }
 0x37c   :  { %v566_v44 = vsel %vm442_vm2, %v560_v42, -inf }
 0x37d   :  { %567 = vmax.xlane.f32.xlu0 %v566_v44  ;;  %v678_v45 = vpop.f32.mrf.mxu0 }
 0x37e   :  { %v679_v46 = vadd.f32 %v678_v45, %v127_v26 }
 0x37f   :  { %v3287_v47 = vpop.f32.mrf.mxu0 }
 0x380   :  { %v685_v48 = vsel %vm442_vm2, %v679_v46, -inf }
 0x381   :  { %686 = vmax.xlane.f32.xlu0 %v685_v48  ;;  %v681_v49 = vpop.f32.mrf.mxu0 }
 0x382   :  { %v682_v52 = vadd.f32 %v681_v49, %v128_v31 }
 0x383   :  { %v3288_v53 = vpop.f32.mrf.mxu0 }
 0x384   :  { %v688_v57 = vsel %vm442_vm2, %v682_v52, -inf }
 0x385   :  { %689 = vmax.xlane.f32.xlu1 %v688_v57  ;;  %v799_v59 = vpop.f32.mrf.mxu0 }
 0x386   :  { %v800_v60 = vadd.f32 %v799_v59, %v127_v26 }
 0x387   :  { %v3299_v61 = vpop.f32.mrf.mxu0 }
 0x388   :  { %v806_v62 = vsel %vm442_vm2, %v800_v60, -inf }
 0x389   :  { %807 = vmax.xlane.f32.xlu0 %v806_v62  ;;  %v802_v63 = vpop.f32.mrf.mxu0 }
 0x38a   :  { %v4018_v0 = vadd.f32 %v802_v63, %v128_v31 }
 0x38b   :  { %v3300_v1 = vpop.f32.mrf.mxu0 }
 0x38c   :  { %v809_v2 = vsel %vm442_vm2, %v4018_v0, -inf }
 0x38d   :  { %810 = vmax.xlane.f32.xlu1 %v809_v2 }
 0x38f   :  { %v445_v3 = vpop.xlane.xlu0 %444 }
 0x390   :  { %v449_v5 = vsub.f32 %v436_v29, %v445_v3 }
 0x392   :  { %v451_v6 = vmul.f32 1.442695, %v449_v5 }
 0x393   :  { %v448_v7 = vpop.xlane.xlu1 %447 }
 0x394   :  { %3652 = vpow2.f32 %v451_v6  ;;  %v450_v8 = vsub.f32 %v439_v34, %v448_v7 }
 0x396   :  { %v453_v9 = vmul.f32 1.442695, %v450_v8 }
 0x398   :  { %3654 = vpow2.f32 %v453_v9 }
 0x3a1   :  { %v3653_v10 = vpop.eup %3652 }
 0x3a2   :  { %v455_v11 = vsel %vm442_vm2, %v3653_v10, 0.0 }
 0x3a3   :  { %456 = vadd.xlane.f32.xlu0 %v455_v11 }
 0x3a5   :  { %v3655_v12 = vpop.eup %3654 }
 0x3a6   :  { %v458_v14 = vsel %vm442_vm2, %v3655_v12, 0.0 }
 0x3a7   :  { %459 = vadd.xlane.f32.xlu1 %v458_v14 }
 0x402   :  { %v565_v15 = vpop.xlane.xlu0 %564 }
 0x403   :  { %v569_v16 = vsub.f32 %v557_v38, %v565_v15 }
 0x405   :  { %v571_v17 = vmul.f32 1.442695, %v569_v16 }
 0x406   :  { %v568_v18 = vpop.xlane.xlu0 %567 }
 0x407   :  { %3656 = vpow2.f32 %v571_v17  ;;  %v570_v19 = vsub.f32 %v560_v42, %v568_v18 }
 0x409   :  { %v573_v20 = vmul.f32 1.442695, %v570_v19 }
 0x40a   :  { %v687_v21 = vpop.xlane.xlu0 %686 }
 0x40b   :  { %3658 = vpow2.f32 %v573_v20  ;;  %v691_v22 = vsub.f32 %v679_v46, %v687_v21 }
 0x40d   :  { %v693_v23 = vmul.f32 1.442695, %v691_v22 }
 0x40e   :  { %v690_v24 = vpop.xlane.xlu1 %689 }
 0x40f   :  { %3660 = vpow2.f32 %v693_v23  ;;  %v692_v25 = vsub.f32 %v682_v52, %v690_v24 }
 0x411   :  { %v695_v26 = vmul.f32 1.442695, %v692_v25 }
 0x412   :  { %v808_v28 = vpop.xlane.xlu0 %807 }
 0x413   :  { %3662 = vpow2.f32 %v695_v26  ;;  %v812_v29 = vsub.f32 %v800_v60, %v808_v28  ;;  %v3512_v28 = vld [vmem:[#allocation2 + $0x15c] ss:$24 sps:$4 sm:$0xff]  }
 0x414   :  { %v3657_v30 = vpop.eup %3656  ;;  %3308 = vmatpush3.bf16.msra.mxu0 %v3512_v28  ;;  %v3526_v28 = vld [vmem:[#allocation2 + $0x100] ss:$24 sps:$4 sm:$0xff]  }
 0x415   :  { %v814_v31 = vmul.f32 1.442695, %v812_v29  ;;  %v575_v32 = vsel %vm442_vm2, %v3657_v30, 0.0  ;;  %3309 = vmatprep.subr.bf16.mxu0 %v3846_v4 }
 0x416   :  { %576 = vadd.xlane.f32.xlu0 %v575_v32  ;;  %v811_v41 = vpop.xlane.xlu1 %810 }
 0x417   :  { %3664 = vpow2.f32 %v814_v31  ;;  %v813_v46 = vsub.f32 %v4018_v0, %v811_v41  ;;  %v3513_v31 = vld [vmem:[#allocation2 + $0x12c] ss:$24 sps:$4 sm:$0xff]   ;;  %v3518_v41 = vld [vmem:[#allocation2 + $0x3c] ss:$24 sps:$4 sm:$0xff]  }
 0x418   :  { %v3659_v33 = vpop.eup %3658  ;;  %3310 = vmatpush3.bf16.msra.mxu0 %v3513_v31  ;;  %v3534_v31 = vld [vmem:[#allocation2 + $0xa4] ss:$24 sps:$4 sm:$0xff]  }
 0x419   :  { %v578_v34 = vsel %vm442_vm2, %v3659_v33, 0.0  ;;  %v816_v52 = vmul.f32 1.442695, %v813_v46  ;;  %3311 = vmatprep.subr.bf16.mxu0 %v3846_v4 }
 0x41a   :  { %579 = vadd.xlane.f32.xlu1 %v578_v34  ;;  %v3514_v34 = vld [vmem:[#allocation2 + $0xfc] ss:$24 sps:$4 sm:$0xff]  }
 0x41c   :  { %v3661_v35 = vpop.eup %3660  ;;  %3312 = vmatpush3.bf16.msra.mxu0 %v3514_v34  ;;  %v3535_v34 = vld [vmem:[#allocation2 + $0x70] ss:$24 sps:$4 sm:$0xff]  }
 0x41d   :  { %v697_v36 = vsel %vm442_vm2, %v3661_v35, 0.0  ;;  %3313 = vmatprep.subr.bf16.mxu0 %v3846_v4 }
 0x41e   :  { %698 = vadd.xlane.f32.xlu0 %v697_v36 }
 0x420   :  { %v3663_v37 = vpop.eup %3662 }
 0x421   :  { %v700_v38 = vsel %vm442_vm2, %v3663_v37, 0.0 }
 0x422   :  { %701 = vadd.xlane.f32.xlu1 %v700_v38  ;;  %v3515_v38 = vld [vmem:[#allocation2 + $0xcc] ss:$24 sps:$4 sm:$0xff]  }
 0x423   :  { %3314 = vmatpush3.bf16.msra.mxu0 %v3515_v38  ;;  %v3541_v38 = vld [vmem:[#allocation2 + $0x10] ss:$24 sps:$4 sm:$0xff]  }
 0x424   :  { %v3665_v39 = vpop.eup %3664  ;;  %3315 = vmatprep.subr.bf16.mxu0 %v3846_v4 }
 0x425   :  { %v818_v40 = vsel %vm442_vm2, %v3665_v39, 0.0 }
 0x426   :  { %819 = vadd.xlane.f32.xlu0 %v818_v40  ;;  %v3517_v40 = vld [vmem:[#allocation2 + $0x6c] ss:$24 sps:$4 sm:$0xff]  }
 0x42c   :  { %v457_v42 = vpop.xlane.xlu0 %456 }
 0x42d   :  { %3666 = vrcp.f32 %v457_v42  ;;  %v3519_v42 = vld [vmem:[#allocation2 + $0xc] ss:$24 sps:$4 sm:$0xff]  }
 0x430   :  { %v460_v43 = vpop.xlane.xlu1 %459 }
 0x431   :  { %3668 = vrcp.f32 %v460_v43 }
 0x432   :  { %3670 = vpow2.f32 %v816_v52 }
 0x433   :  { %708 = vrot.lane.b32.xlu1 %v3975_v13, %s3843_s25 }
 0x43a   :  { %v3667_v44 = vpop.eup %3666 }
 0x43b   :  { %v463_v47 = vmul.f32 %v3667_v44, %v3653_v10 }
 0x43c   :  { %587 = vrot.lane.b32.xlu0 %v3975_v13, %s3849_s2 }
 0x43e   :  { %v3669_v45 = vpop.eup %3668 }
 0x43f   :  { %v464_v48 = vmul.f32 %v3669_v45, %v3655_v12  ;;  %v3671_v53 = vpop.eup %3670 }
 0x440   :  { %v821_v57 = vsel %vm442_vm2, %v3671_v53, 0.0 }
 0x441   :  { %v465_v49 = vpack.c.bf16 %v464_v48, %v463_v47 }
 0x443   :  { %3268 = vmatmul.mubr.msk.bf16.vlgmr.msra.gmra.mxu1 %vm442_vm2, %v465_v49 }
 0x444   :  { %3279 = vmatprep.mubr.msk.bf16.mxu1 %vm3848_vm0, %v3846_v4 }
 0x457   :  { %822 = vadd.xlane.f32.xlu1 %v821_v57 }
 0x468   :  { %829 = vrot.lane.b32.xlu1 %v3975_v13, %s3850_s17 }
 0x49f   :  { %v577_v59 = vpop.xlane.xlu0 %576 }
 0x4a0   :  { %3672 = vrcp.f32 %v577_v59 }
 0x4a3   :  { %v580_v60 = vpop.xlane.xlu1 %579 }
 0x4a4   :  { %3674 = vrcp.f32 %v580_v60 }
 0x4a7   :  { %v699_v61 = vpop.xlane.xlu0 %698 }
 0x4a8   :  { %3676 = vrcp.f32 %v699_v61 }
 0x4ab   :  { %v702_v62 = vpop.xlane.xlu1 %701 }
 0x4ac   :  { %3678 = vrcp.f32 %v702_v62 }
 0x4ad   :  { %v3673_v63 = vpop.eup %3672 }
 0x4ae   :  { %v583_v2 = vmul.f32 %v3673_v63, %v3657_v30 }
 0x4af   :  { %v820_v0 = vpop.xlane.xlu0 %819  ;;  %v709_v13 = vpop.permute.xlu1 %708 }
 0x4b0   :  { %3680 = vrcp.f32 %v820_v0 }
 0x4b1   :  { %v3675_v1 = vpop.eup %3674 }
 0x4b2   :  { %v584_v3 = vmul.f32 %v3675_v1, %v3659_v33 }
 0x4b3   :  { %v588_v5 = vpop.permute.xlu0 %587 }
 0x4b4   :  { %3278 = vmatpush3.bf16.msra.mxu1 %v588_v5  ;;  %v585_v6 = vpack.c.bf16 %v584_v3, %v583_v2 }
 0x4b5   :  { %3289 = vmatprep.subr.bf16.mxu1 %v3846_v4  ;;  %v3677_v7 = vpop.eup %3676 }
 0x4b6   :  { %v705_v9 = vmul.f32 %v3677_v7, %v3661_v35  ;;  %v2953_v7 = vld [vmem:[#allocation4 + $0x3] ss:$0 sm:$0xff] }
 0x4b7   :  { %3280 = vmatmul.mubr.msk.bf16.vlgmr.msra.gmra.mxu1 %vm442_vm2, %v585_v6 }
 0x4b8   :  { %3290 = vmatpush3.bf16.msra.mxu1 %v709_v13  ;;  %3291 = vmatprep.mubr.msk.bf16.mxu1 %vm3848_vm0, %v3846_v4 }
 0x4b9   :  { %v3679_v8 = vpop.eup %3678  ;;  %3301 = vmatprep.subr.bf16.mxu1 %v3846_v4 }
 0x4ba   :  { %v706_v10 = vmul.f32 %v3679_v8, %v3663_v37 }
 0x4bc   :  { %v707_v11 = vpack.c.bf16 %v706_v10, %v705_v9 }
 0x4bd   :  { %v3681_v15 = vpop.eup %3680 }
 0x4be   :  { %v826_v17 = vmul.f32 %v3681_v15, %v3665_v39  ;;  %v3516_v39 = vld [vmem:[#allocation2 + $0x9c] ss:$24 sps:$4 sm:$0xff]  }
 0x4bf   :  { %3292 = vmatmul.mubr.msk.bf16.vlgmr.msra.gmra.mxu1 %vm442_vm2, %v707_v11  ;;  %3316 = vmatpush3.bf16.msra.mxu0 %v3516_v39 }
 0x4c0   :  { %3303 = vmatprep.mubr.msk.bf16.mxu1 %vm3848_vm0, %v3846_v4  ;;  %3317 = vmatprep.subr.bf16.mxu0 %v3846_v4 }
 0x4c3   :  { %3318 = vmatpush3.bf16.msra.mxu0 %v3517_v40 }
 0x4c4   :  { %3319 = vmatprep.subr.bf16.mxu0 %v3846_v4 }
 0x4c7   :  { %3320 = vmatpush3.bf16.msra.mxu0 %v3518_v41 }
 0x4c8   :  { %3321 = vmatprep.subr.bf16.mxu0 %v3846_v4 }
 0x4cb   :  { %3322 = vmatpush3.bf16.msra.mxu0 %v3519_v42 }
 0x4e0   :  { %v823_v12 = vpop.xlane.xlu1 %822 }
 0x4e1   :  { %3682 = vrcp.f32 %v823_v12 }
 0x4e4   :  { %v830_v14 = vpop.permute.xlu1 %829 }
 0x4e5   :  { %3302 = vmatpush3.bf16.msra.mxu1 %v830_v14 }
 0x4ee   :  { %v3683_v16 = vpop.eup %3682 }
 0x4ef   :  { %v827_v18 = vmul.f32 %v3683_v16, %v3671_v53  ;;  %v3520_v16 = vld [vmem:[#allocation2 + $0x160] ss:$24 sps:$4 sm:$0xff]  }
 0x4f1   :  { %v828_v19 = vpack.c.bf16 %v827_v18, %v826_v17  ;;  %v3522_v17 = vld [vmem:[#allocation2 + $0x164] ss:$24 sps:$4 sm:$0xff]  }
 0x4f2   :  { %1168 = vmatprep.subr.bf16.mxu1 %v3522_v17 }
 0x4f3   :  { %3304 = vmatmul.mubr.msk.bf16.vlgmr.msra.gmra.mxu1 %vm442_vm2, %v828_v19 }
 0x4f4   :  { %1200 = vmatprep.mubr.bf16.mxu1 %v3847_v27  ;;  %1169 = vmatpush1.bf16.msra.mxu1 %v3520_v16 }
 0x503   :  { %v503_v20 = vpop.f32.mrf.mxu1 }
 0x505   :  { %v3269_v21 = vpop.f32.mrf.mxu1 }
 0x507   :  { %v506_v22 = vpop.f32.mrf.mxu1 }
 0x509   :  { %v3270_v23 = vpop.f32.mrf.mxu1 }
 0x577   :  { %v627_v24 = vpop.f32.mrf.mxu1 }
 0x579   :  { %v3281_v25 = vpop.f32.mrf.mxu1 }
 0x57a   :  { %v3525_v25 = vld [vmem:[#allocation2 + $0x134] ss:$24 sps:$4 sm:$0xff]  }
 0x57b   :  { %v630_v26 = vpop.f32.mrf.mxu1  ;;  %1170 = vmatprep.subr.bf16.mxu1 %v3525_v25 }
 0x57c   :  { %v3450_v29 = vpack.i.bf16 %v630_v26, %v627_v24  ;;  %v3523_v26 = vld [vmem:[#allocation2 + $0x130] ss:$24 sps:$4 sm:$0xff]  }
 0x57d   :  { %v3282_v30 = vpop.f32.mrf.mxu1  ;;  %1171 = vmatpush1.bf16.msra.mxu1 %v3523_v26 }
 0x57e   :  { %3451 = vrot.lane.b32.xlu1 %v3450_v29, %s3850_s17  ;;  %v3529_v29 = vld [vmem:[#allocation2 + $0xd0] ss:$24 sps:$4 sm:$0xff]   ;;  %v3531_v30 = vld [vmem:[#allocation2 + $0xd4] ss:$24 sps:$4 sm:$0xff]  }
 0x57f   :  { %v748_v32 = vpop.f32.mrf.mxu1 }
 0x581   :  { %v3293_v33 = vpop.f32.mrf.mxu1 }
 0x582   :  { %v3537_v33 = vld [vmem:[#allocation2 + $0x74] ss:$24 sps:$4 sm:$0xff]  }
 0x583   :  { %v751_v35 = vpop.f32.mrf.mxu1 }
 0x584   :  { %v3455_v36 = vpack.i.bf16 %v751_v35, %v748_v32  ;;  %v3532_v32 = vld [vmem:[#allocation2 + $0xa0] ss:$24 sps:$4 sm:$0xff]   ;;  %v3540_v35 = vld [vmem:[#allocation2 + $0x44] ss:$24 sps:$4 sm:$0xff]  }
 0x585   :  { %v3294_v37 = vpop.f32.mrf.mxu1 }
 0x586   :  { %3456 = vrot.lane.b32.xlu0 %v3455_v36, %s3843_s25  ;;  %v3538_v36 = vld [vmem:[#allocation2 + $0x40] ss:$24 sps:$4 sm:$0xff]   ;;  %v3543_v37 = vld [vmem:[#allocation2 + $0x14] ss:$24 sps:$4 sm:$0xff]  }
 0x5b3   :  { %v869_v43 = vpop.f32.mrf.mxu1 }
 0x5b5   :  { %v3305_v44 = vpop.f32.mrf.mxu1 }
 0x5b7   :  { %v872_v45 = vpop.f32.mrf.mxu1 }
 0x5b8   :  { %v3460_v46 = vpack.i.bf16 %v872_v45, %v869_v43 }
 0x5b9   :  { %v3306_v47 = vpop.f32.mrf.mxu1 }
 0x5ba   :  { %3461 = vrot.lane.b32.xlu1 %v3460_v46, %s3849_s2  ;;  %v2962_v47 = vld [vmem:[#allocation6] ss:$0 sm:$0xff] }
 0x5f0   :  { %v3452_v48 = vpop.permute.xlu1 %3451 }
 0x5f1   :  { %v3454_v52 = vunpack.i.h.bf16 %v3452_v48  ;;  %v3453_v53 = vunpack.i.l.bf16 %v3452_v48 }
 0x5f3   :  { %v901_v61 = vsel %vm394_vm1, %v506_v22, %v3454_v52  ;;  %v900_v62 = vsel %vm394_vm1, %v503_v20, %v3453_v53  ;;  %v2963_v53 = vld [vmem:[#allocation6 + $0x1] ss:$0 sm:$0xff] }
 0x5f8   :  { %v3457_v49 = vpop.permute.xlu0 %3456 }
 0x5f9   :  { %v3459_v57 = vunpack.i.h.bf16 %v3457_v49  ;;  %v3458_v59 = vunpack.i.l.bf16 %v3457_v49 }
 0x5fb   :  { %v903_v1 = vsel %vm902_vm3, %v900_v62, %v3458_v59  ;;  %v904_v2 = vsel %vm902_vm3, %v901_v61, %v3459_v57  ;;  %v3544_v62 = vld [vmem:[%s4351_s4 + $0x78] sm:$0xff]  }
 0x5fc   :  { %3152 = vmatprep.subr.bf16.mxu0 %v3544_v62 }
 0x62c   :  { %v3462_v60 = vpop.permute.xlu1 %3461 }
 0x62d   :  { %v3464_v63 = vunpack.i.h.bf16 %v3462_v60  ;;  %v3463_v0 = vunpack.i.l.bf16 %v3462_v60 }
 0x62f   :  { %v906_v3 = vsel %vm905_vm4, %v903_v1, %v3463_v0  ;;  %v907_v5 = vsel %vm905_vm4, %v904_v2, %v3464_v63  ;;  %v3545_v63 = vld [vmem:[%s4351_s4 + $0x38] sm:$0xff]   ;;  %v3546_v0 = vld [vmem:[%s4351_s4 + $0x70] sm:$0xff]   ;;  %v3548_v2 = vld [vmem:[%s4351_s4 + $0x68] sm:$0xff]  }
 0x630   :  { %v924_v6 = vpack.c.bf16 %v907_v5, %v906_v3  ;;  %v3547_v1 = vld [vmem:[%s4351_s4 + $0x30] sm:$0xff]   ;;  %v3549_v3 = vld [vmem:[%s4351_s4 + $0x28] sm:$0xff]   ;;  %v3550_v5 = vld [vmem:[%s4351_s4 + $0x60] sm:$0xff]  }
 0x632   :  { %3324 = vmatmul.mubr.bf16.vlgmr.msra.gmra.mxu0 %v924_v6  ;;  %v3551_v6 = vld [vmem:[%s4351_s4 + $0x20] sm:$0xff]  }
 0x633   :  { %3153 = vmatpush3.bf16.msra.mxu0 %v3545_v63 }
 0x634   :  { %3154 = vmatprep.subr.bf16.mxu0 %v3546_v0 }
 0x637   :  { %3155 = vmatpush3.bf16.msra.mxu0 %v3547_v1 }
 0x638   :  { %3156 = vmatprep.subr.bf16.mxu0 %v3548_v2 }
 0x63b   :  { %3157 = vmatpush3.bf16.msra.mxu0 %v3549_v3 }
 0x63c   :  { %3158 = vmatprep.subr.bf16.mxu0 %v3550_v5 }
 0x63f   :  { %3159 = vmatpush3.bf16.msra.mxu0 %v3551_v6 }
 0x6f2   :  { %v1014_v13 = vpop.f32.mrf.mxu0 }
 0x6f3   :  { %v1015_v8 = vadd.f32 %v2953_v7, %v1014_v13  ;;  %v3553_v13 = vld [vmem:[%s4351_s4 + $0x18] sm:$0xff]  }
 0x6f4   :  { %v3325_v9 = vpop.f32.mrf.mxu0 }
 0x6f5   :  { %v1021_v10 = vadd.f32 %v1015_v8, %v3952_v50  ;;  %v3554_v8 = vld [vmem:[%s4351_s4 + $0x50] sm:$0xff]  }
 0x6f6   :  { %v1017_v11 = vpop.f32.mrf.mxu0  ;;  %v3555_v9 = vld [vmem:[%s4351_s4 + $0x10] sm:$0xff]  }
 0x6f7   :  { %v1018_v12 = vadd.f32 %v2953_v7, %v1017_v11  ;;  %1025 = vadd.xlane.f32.xlu0 %v1021_v10  ;;  %v3552_v7 = vld [vmem:[%s4351_s4 + $0x58] sm:$0xff]   ;;  %v3557_v11 = vld [vmem:[%s4351_s4 + $0x8] sm:$0xff]  }
 0x6f8   :  { %v3326_v14 = vpop.f32.mrf.mxu0  ;;  %3160 = vmatprep.subr.bf16.mxu0 %v3552_v7 }
 0x6f9   :  { %v1022_v15 = vadd.f32 %v1018_v12, %v3954_v51  ;;  %v3528_v51 = vld [vmem:[#allocation2 + $0x104] ss:$24 sps:$4 sm:$0xff]   ;;  %3161 = vmatpush3.bf16.msra.mxu0 %v3553_v13 }
 0x6fa   :  { %1172 = vmatprep.subr.bf16.mxu1 %v3528_v51  ;;  %3162 = vmatprep.subr.bf16.mxu0 %v3554_v8  ;;  %v3558_v12 = vld [vmem:[%s4351_s4 + $0x40] sm:$0xff]  }
 0x6fb   :  { %1027 = vadd.xlane.f32.xlu1 %v1022_v15  ;;  %1173 = vmatpush1.bf16.msra.mxu1 %v3526_v28  ;;  %v3559_v14 = vld [vmem:[%s4351_s4] sm:$0xff]  }
 0x6fc   :  { %1174 = vmatprep.subr.bf16.mxu1 %v3531_v30  ;;  %v2980_v8 = vld [vmem:[#allocation4 + $0x6] ss:$0 sm:$0xff] }
 0x6fd   :  { %3163 = vmatpush3.bf16.msra.mxu0 %v3555_v9 }
 0x6ff   :  { %1175 = vmatpush1.bf16.msra.mxu1 %v3529_v29 }
 0x700   :  { %1176 = vmatprep.subr.bf16.mxu1 %v3534_v31 }
 0x703   :  { %1177 = vmatpush1.bf16.msra.mxu1 %v3532_v32 }
 0x704   :  { %1178 = vmatprep.subr.bf16.mxu1 %v3537_v33 }
 0x707   :  { %1179 = vmatpush1.bf16.msra.mxu1 %v3535_v34 }
 0x708   :  { %1180 = vmatprep.subr.bf16.mxu1 %v3540_v35 }
 0x70b   :  { %1181 = vmatpush1.bf16.msra.mxu1 %v3538_v36 }
 0x70c   :  { %1182 = vmatprep.subr.bf16.mxu1 %v3543_v37 }
 0x70f   :  { %1183 = vmatpush1.bf16.msra.mxu1 %v3541_v38 }
 0x780   :  { %v1026_v18 = vpop.xlane.xlu0 %1025 }
 0x781   :  { %v1029_v19 = vmul.f32 0.0078125, %v1026_v18 }
 0x783   :  { %v1031_v20 = vsub.f32 %v1021_v10, %v1029_v19  ;;  %v3556_v10 = vld [vmem:[%s4351_s4 + $0x48] sm:$0xff]  }
 0x784   :  { %v1028_v21 = vpop.xlane.xlu1 %1027  ;;  %3164 = vmatprep.subr.bf16.mxu0 %v3556_v10 }
 0x785   :  { %v1030_v22 = vmul.f32 0.0078125, %v1028_v21  ;;  %v1033_v23 = vmul.f32 %v1031_v20, %v1031_v20  ;;  %3165 = vmatpush3.bf16.msra.mxu0 %v3557_v11 }
 0x786   :  { %3166 = vmatprep.subr.bf16.mxu0 %v3558_v12 }
 0x787   :  { %v1032_v24 = vsub.f32 %v1022_v15, %v1030_v22  ;;  %1035 = vadd.xlane.f32.xlu0 %v1033_v23  ;;  %v1076_v15 = vld [vmem:[#allocation4 + $0x4] sm:$0x3] }
 0x788   :  { %v1081_v16 = vrot.slane %v1076_v15, %v3965_v55  ;;  %v1085_v17 = vrot.slane %v1076_v15, %v3969_v58 }
 0x789   :  { %v1034_v50 = vmul.f32 %v1032_v24, %v1032_v24  ;;  %3167 = vmatpush3.bf16.msra.mxu0 %v3559_v14 }
 0x78a   :  { %3327 = vmatprep.subr.bf16.mxu0 %v3846_v4 }
 0x78b   :  { %1037 = vadd.xlane.f32.xlu0 %v1034_v50 }
 0x810   :  { %v1036_v39 = vpop.xlane.xlu0 %1035 }
 0x811   :  { %v1039_v40 = vmul.f32 0.0078125, %v1036_v39 }
 0x813   :  { %v1041_v41 = vadd.f32 1e-12, %v1039_v40 }
 0x814   :  { %v1038_v42 = vpop.xlane.xlu0 %1037 }
 0x815   :  { %3684 = vrsqrt.f32 %v1041_v41  ;;  %v1040_v43 = vmul.f32 0.0078125, %v1038_v42 }
 0x817   :  { %v1042_v44 = vadd.f32 1e-12, %v1040_v43 }
 0x819   :  { %3686 = vrsqrt.f32 %v1042_v44 }
 0x822   :  { %v3685_v45 = vpop.eup %3684 }
 0x823   :  { %v1045_v46 = vmul.f32 %v3685_v45, %v1031_v20 }
 0x825   :  { %v1051_v52 = vmul.f32 %v2962_v47, %v1045_v46 }
 0x826   :  { %v3687_v48 = vpop.eup %3686 }
 0x827   :  { %v1046_v49 = vmul.f32 %v3687_v48, %v1032_v24  ;;  %v4068_v59 = vadd.f32 %v2963_v53, %v1051_v52 }
 0x829   :  { %v1052_v57 = vmul.f32 %v2962_v47, %v1046_v49 }
 0x82b   :  { %v4070_v60 = vadd.f32 %v2963_v53, %v1052_v57 }
 0x82d   :  { %v1075_v61 = vpack.c.bf16 %v4070_v60, %v4068_v59 }
 0x82f   :  { %1201 = vmatmul.mubr.bf16.vlgmr.msra.gmra.mxu1 %v1075_v61 }
 0x830   :  { %1675 = vmatprep.mubr.bf16.mxu1 %v3847_v27 }
 0x8ef   :  { %v1202_v18 = vpop.f32.mrf.mxu1 }
 0x8f0   :  { %v1203_v19 = vadd.f32 %v1202_v18, %v1081_v16 }
 0x8f1   :  { %v1204_v20 = vpop.f32.mrf.mxu1 }
 0x8f2   :  { %v1215_v21 = vmul.f32 0.044715, %v1203_v19  ;;  %v1205_v22 = vadd.f32 %v1204_v20, %v1085_v17  ;;  %v1211_v0 = vmul.f32 0.5, %v1203_v19  ;;  %v3562_v20 = vld [vmem:[#allocation2 + $0x2d4] ss:$24 sps:$4 sm:$0xff]  }
 0x8f3   :  { %v1206_v23 = vpop.f32.mrf.mxu1  ;;  %1643 = vmatprep.subr.bf16.mxu1 %v3562_v20 }
 0x8f4   :  { %v1219_v24 = vmul.f32 %v1215_v21, %v1203_v19  ;;  %v1216_v50 = vmul.f32 0.044715, %v1205_v22  ;;  %v1207_v25 = vadd.f32 %v1206_v23, %v1081_v16  ;;  %v1212_v61 = vmul.f32 0.5, %v1205_v22  ;;  %v3563_v21 = vld [vmem:[#allocation2 + $0x2d8] ss:$24 sps:$4 sm:$0xff]  }
 0x8f5   :  { %v1208_v26 = vpop.f32.mrf.mxu1 }
 0x8f6   :  { %v1223_v51 = vmul.f32 %v1219_v24, %v1203_v19  ;;  %v1220_v28 = vmul.f32 %v1216_v50, %v1205_v22  ;;  %v1217_v29 = vmul.f32 0.044715, %v1207_v25  ;;  %v1209_v30 = vadd.f32 %v1208_v26, %v1085_v17 }
 0x8f7   :  { %v1213_v53 = vmul.f32 0.5, %v1207_v25 }
 0x8f8   :  { %v1227_v31 = vadd.f32 %v1223_v51, %v1203_v19  ;;  %v1224_v32 = vmul.f32 %v1220_v28, %v1205_v22  ;;  %v1221_v33 = vmul.f32 %v1217_v29, %v1207_v25  ;;  %v1218_v34 = vmul.f32 0.044715, %v1209_v30  ;;  %v3560_v19 = vld [vmem:[#allocation2 + $0x2d0] ss:$24 sps:$4 sm:$0xff]   ;;  %v3566_v51 = vld [vmem:[#allocation2 + $0x2a4] ss:$24 sps:$4 sm:$0xff]  }
 0x8f9   :  { %v1214_v62 = vmul.f32 0.5, %v1209_v30  ;;  %1644 = vmatpush1.bf16.msra.mxu1 %v3560_v19  ;;  %v3564_v28 = vld [vmem:[#allocation2 + $0x2a0] ss:$24 sps:$4 sm:$0xff]  }
 0x8fa   :  { %v1225_v35 = vmul.f32 %v1221_v33, %v1207_v25  ;;  %v1222_v36 = vmul.f32 %v1218_v34, %v1209_v30  ;;  %v1228_v37 = vadd.f32 %v1224_v32, %v1205_v22  ;;  %v1231_v38 = vmul.f32 0.7978846, %v1227_v31  ;;  %v3567_v29 = vld [vmem:[#allocation2 + $0x2a8] ss:$24 sps:$4 sm:$0xff]   ;;  %1645 = vmatprep.subr.bf16.mxu1 %v3566_v51  ;;  %v3571_v32 = vld [vmem:[#allocation2 + $0x278] ss:$24 sps:$4 sm:$0xff]  }
 0x8fb   :  { %v3568_v31 = vld [vmem:[#allocation2 + $0x270] ss:$24 sps:$4 sm:$0xff]   ;;  %v3572_v33 = vld [vmem:[#allocation2 + $0x240] ss:$24 sps:$4 sm:$0xff]   ;;  %v3574_v34 = vld [vmem:[#allocation2 + $0x244] ss:$24 sps:$4 sm:$0xff]  }
 0x8fc   :  { %v1229_v39 = vadd.f32 %v1225_v35, %v1207_v25  ;;  %v1226_v40 = vmul.f32 %v1222_v36, %v1209_v30  ;;  %v1232_v41 = vmul.f32 0.7978846, %v1228_v37  ;;  %v3575_v35 = vld [vmem:[#allocation2 + $0x248] ss:$24 sps:$4 sm:$0xff]   ;;  %v3578_v36 = vld [vmem:[#allocation2 + $0x214] ss:$24 sps:$4 sm:$0xff]  }
 0x8fd   :  { %1646 = vmatpush1.bf16.msra.mxu1 %v3564_v28  ;;  %v3576_v37 = vld [vmem:[#allocation2 + $0x210] ss:$24 sps:$4 sm:$0xff]  }
 0x8fe   :  { %v1233_v42 = vmul.f32 0.7978846, %v1229_v39  ;;  %v1230_v43 = vadd.f32 %v1226_v40, %v1209_v30  ;;  %3688 = vtanh.f32 %v1232_v41  ;;  %v3570_v30 = vld [vmem:[#allocation2 + $0x274] ss:$24 sps:$4 sm:$0xff]   ;;  %v3582_v39 = vld [vmem:[#allocation2 + $0x1e4] ss:$24 sps:$4 sm:$0xff]  }
 0x8ff   :  { %3690 = vtanh.f32 %v1231_v38  ;;  %1647 = vmatprep.subr.bf16.mxu1 %v3570_v30  ;;  %v3579_v38 = vld [vmem:[#allocation2 + $0x218] ss:$24 sps:$4 sm:$0xff]   ;;  %v3583_v41 = vld [vmem:[#allocation2 + $0x1e8] ss:$24 sps:$4 sm:$0xff]  }
 0x900   :  { %3692 = vtanh.f32 %v1233_v42  ;;  %v1234_v44 = vmul.f32 0.7978846, %v1230_v43  ;;  %v3580_v40 = vld [vmem:[#allocation2 + $0x1e0] ss:$24 sps:$4 sm:$0xff]   ;;  %v3586_v42 = vld [vmem:[#allocation2 + $0x1b4] ss:$24 sps:$4 sm:$0xff]  }
 0x901   :  { %1648 = vmatpush1.bf16.msra.mxu1 %v3568_v31  ;;  %v3584_v43 = vld [vmem:[#allocation2 + $0x1b0] ss:$24 sps:$4 sm:$0xff]  }
 0x902   :  { %3694 = vtanh.f32 %v1234_v44  ;;  %1649 = vmatprep.subr.bf16.mxu1 %v3574_v34  ;;  %v3587_v44 = vld [vmem:[#allocation2 + $0x1b8] ss:$24 sps:$4 sm:$0xff]  }
 0x905   :  { %1650 = vmatpush1.bf16.msra.mxu1 %v3572_v33  ;;  %v4182_v33 = vld [vmem:[%s4348_s1 + $0x8] sm:$0xff] }
 0x906   :  { %1651 = vmatprep.subr.bf16.mxu1 %v3578_v36 }
 0x909   :  { %1652 = vmatpush1.bf16.msra.mxu1 %v3576_v37 }
 0x90a   :  { %1653 = vmatprep.subr.bf16.mxu1 %v3582_v39 }
 0x90b   :  { %v3689_v45 = vpop.eup %3688 }
 0x90c   :  { %v3691_v46 = vpop.eup %3690  ;;  %v1240_v48 = vadd.f32 1.0, %v3689_v45  ;;  %v3590_v45 = vld [vmem:[#allocation2 + $0x184] ss:$24 sps:$4 sm:$0xff]  }
 0x90d   :  { %v3693_v47 = vpop.eup %3692  ;;  %v1239_v57 = vadd.f32 1.0, %v3691_v46  ;;  %1654 = vmatpush1.bf16.msra.mxu1 %v3580_v40  ;;  %v3588_v46 = vld [vmem:[#allocation2 + $0x180] ss:$24 sps:$4 sm:$0xff]  }
 0x90e   :  { %v1241_v49 = vadd.f32 1.0, %v3693_v47  ;;  %v1244_v2 = vmul.f32 %v1240_v48, %v1212_v61  ;;  %1655 = vmatprep.subr.bf16.mxu1 %v3586_v42  ;;  %v3591_v47 = vld [vmem:[#allocation2 + $0x188] ss:$24 sps:$4 sm:$0xff]  }
 0x90f   :  { %v3695_v52 = vpop.eup %3694  ;;  %v1243_v5 = vmul.f32 %v1239_v57, %v1211_v0  ;;  %v2997_v0 = vld [vmem:[#allocation6 + $0x2] ss:$0 sm:$0xff] }
 0x910   :  { %v1242_v63 = vadd.f32 1.0, %v3695_v52  ;;  %v1245_v1 = vmul.f32 %v1241_v49, %v1213_v53 }
 0x911   :  { %1656 = vmatpush1.bf16.msra.mxu1 %v3584_v43 }
 0x912   :  { %v1246_v3 = vmul.f32 %v1242_v63, %v1214_v62  ;;  %v1279_v7 = vpack.c.bf16 %v1245_v1, %v1243_v5  ;;  %1657 = vmatprep.subr.bf16.mxu1 %v3590_v45  ;;  %v2998_v5 = vld [vmem:[#allocation6 + $0x3] ss:$0 sm:$0xff] }
 0x914   :  { %v1280_v6 = vpack.c.bf16 %v1246_v3, %v1244_v2 }
 0x915   :  { %1658 = vmatpush1.bf16.msra.mxu1 %v3588_v46 }
 0x916   :  { %1416 = vmatprep.mubr.bf16.mxu0 %v1280_v6  ;;  %3347 = vmatprep.subr.bf16.mxu1 %v3846_v4 }
 0x917   :  { %1417 = vmatmul.mubr.bf16.vlgmr.msra.gmra.mxu0 %v1279_v7 }
 0x918   :  { %3343 = vmatprep.mubr.msk.bf16.mxu0 %vm3848_vm0, %v3846_v4  ;;  %3328 = vmatpush3.bf16.msra.mxu0 %v3563_v21 }
 0x919   :  { %3329 = vmatprep.subr.bf16.mxu0 %v3846_v4 }
 0x91c   :  { %3330 = vmatpush3.bf16.msra.mxu0 %v3567_v29 }
 0x91d   :  { %3331 = vmatprep.subr.bf16.mxu0 %v3846_v4 }
 0x920   :  { %3332 = vmatpush3.bf16.msra.mxu0 %v3571_v32 }
 0x921   :  { %3333 = vmatprep.subr.bf16.mxu0 %v3846_v4 }
 0x924   :  { %3334 = vmatpush3.bf16.msra.mxu0 %v3575_v35 }
 0x925   :  { %3335 = vmatprep.subr.bf16.mxu0 %v3846_v4 }
 0x928   :  { %3336 = vmatpush3.bf16.msra.mxu0 %v3579_v38 }
 0x929   :  { %3337 = vmatprep.subr.bf16.mxu0 %v3846_v4 }
 0x92c   :  { %3338 = vmatpush3.bf16.msra.mxu0 %v3583_v41 }
 0x92d   :  { %3339 = vmatprep.subr.bf16.mxu0 %v3846_v4 }
 0x930   :  { %3340 = vmatpush3.bf16.msra.mxu0 %v3587_v44 }
 0x931   :  { %3341 = vmatprep.subr.bf16.mxu0 %v3846_v4 }
 0x934   :  { %3342 = vmatpush3.bf16.msra.mxu0 %v3591_v47 }
 0x935   :  { %3371 = vmatprep.subr.bf16.mxu0 %v3846_v4 }
 0x9d7   :  { %v3168_v13 = vpop.f32.mrf.mxu0 }
 0x9d9   :  { %v3169_v9 = vpop.f32.mrf.mxu0 }
 0x9da   :  { %v3170_v10 = vadd.f32 %v3169_v9, %v3168_v13 }
 0x9db   :  { %v3171_v11 = vpop.f32.mrf.mxu0 }
 0x9dc   :  { %v1419_v12 = vadd.f32 %v3170_v10, %v2980_v8 }
 0x9dd   :  { %v3172_v14 = vpop.f32.mrf.mxu0 }
 0x9de   :  { %v3173_v15 = vadd.f32 %v3172_v14, %v3171_v11  ;;  %v1425_v16 = vadd.f32 %v1419_v12, %v4068_v59  ;;  %v1498_v11 = vld [vmem:[#allocation4 + $0x7] sm:$0x7] }
 0x9e0   :  { %v1422_v17 = vadd.f32 %v3173_v15, %v2980_v8  ;;  %1429 = vadd.xlane.f32.xlu0 %v1425_v16  ;;  %v1507_v15 = vrot.slane %v1498_v11, %v3969_v58 }
 0x9e2   :  { %v1426_v18 = vadd.f32 %v1422_v17, %v4070_v60 }
 0x9e4   :  { %1431 = vadd.xlane.f32.xlu1 %v1426_v18 }
 0xa69   :  { %v1430_v22 = vpop.xlane.xlu0 %1429 }
 0xa6a   :  { %v1433_v23 = vmul.f32 0.0078125, %v1430_v22 }
 0xa6c   :  { %v4131_v24 = vsub.f32 %v1425_v16, %v1433_v23  ;;  %v1503_v23 = vrot.slane %v1498_v11, %v3965_v55 }
 0xa6d   :  { %v1432_v50 = vpop.xlane.xlu1 %1431 }
 0xa6e   :  { %v1434_v25 = vmul.f32 0.0078125, %v1432_v50  ;;  %v1437_v59 = vmul.f32 %v4131_v24, %v4131_v24  ;;  %v1511_v50 = vrot.slane %v1498_v11, %v174_v56  ;;  %v4175_v56 = vld [vmem:[%s4348_s1] sm:$0xff] }
 0xa70   :  { %v4135_v26 = vsub.f32 %v1426_v18, %v1434_v25  ;;  %1439 = vadd.xlane.f32.xlu0 %v1437_v59 }
 0xa72   :  { %v1438_v60 = vmul.f32 %v4135_v26, %v4135_v26 }
 0xa74   :  { %1441 = vadd.xlane.f32.xlu1 %v1438_v60 }
 0xaf9   :  { %v1440_v48 = vpop.xlane.xlu0 %1439 }
 0xafa   :  { %v1443_v49 = vmul.f32 0.0078125, %v1440_v48 }
 0xafc   :  { %v1445_v52 = vadd.f32 1e-12, %v1443_v49 }
 0xafd   :  { %v1442_v53 = vpop.xlane.xlu1 %1441 }
 0xafe   :  { %3696 = vrsqrt.f32 %v1445_v52  ;;  %v1444_v57 = vmul.f32 0.0078125, %v1442_v53 }
 0xb00   :  { %v1446_v61 = vadd.f32 1e-12, %v1444_v57 }
 0xb02   :  { %3698 = vrsqrt.f32 %v1446_v61 }
 0xb0b   :  { %v3697_v62 = vpop.eup %3696 }
 0xb0c   :  { %v1449_v63 = vmul.f32 %v3697_v62, %v4131_v24 }
 0xb0e   :  { %v1455_v3 = vmul.f32 %v2997_v0, %v1449_v63 }
 0xb0f   :  { %v3699_v1 = vpop.eup %3698 }
 0xb10   :  { %v1450_v2 = vmul.f32 %v3699_v1, %v4135_v26  ;;  %v4149_v7 = vadd.f32 %v2998_v5, %v1455_v3 }
 0xb12   :  { %v1456_v6 = vmul.f32 %v2997_v0, %v1450_v2 }
 0xb14   :  { %v4151_v13 = vadd.f32 %v2998_v5, %v1456_v6 }
 0xb16   :  { %v1496_v8 = vpack.c.bf16 %v4151_v13, %v4149_v7 }
 0xb18   :  { %1676 = vmatmul.mubr.bf16.vlgmr.msra.gmra.mxu1 %v1496_v8  ;;  %3344 = vmatmul.mubr.bf16.vlgmr.msra.gmra.mxu0 %v1496_v8 }
 0xb19   :  { %3349 = vmatprep.mubr.msk.bf16.mxu1 %vm3848_vm0, %v3846_v4  ;;  %3373 = vmatprep.mubr.msk.bf16.mxu0 %vm3848_vm0, %v3846_v4 }
 0xbd8   :  { %v1677_v9 = vpop.f32.mrf.mxu1  ;;  %v1720_v10 = vpop.f32.mrf.mxu0 }
 0xbd9   :  { %v1678_v26 = vadd.f32 %v1677_v9, %v1503_v23  ;;  %v1721_v60 = vadd.f32 %v1720_v10, %v1511_v50 }
 0xbda   :  { %v1679_v12 = vpop.f32.mrf.mxu1  ;;  %v3345_v14 = vpop.f32.mrf.mxu0 }
 0xbdb   :  { %v1680_v20 = vadd.f32 %v1679_v12, %v1507_v15 }
 0xbdc   :  { %v1681_v16 = vpop.f32.mrf.mxu1  ;;  %v1723_v17 = vpop.f32.mrf.mxu0 }
 0xbdd   :  { %v1682_v25 = vadd.f32 %v1681_v16, %v1503_v23  ;;  %v1724_v59 = vadd.f32 %v1723_v17, %v1511_v50 }
 0xbde   :  { %v1683_v18 = vpop.f32.mrf.mxu1  ;;  %v3346_v19 = vpop.f32.mrf.mxu0 }
 0xbdf   :  { %v1684_v21 = vadd.f32 %v1683_v18, %v1507_v15  ;;  %v1727_v51 = vpack.c.bf16 %v1682_v25, %v1678_v26  ;;  %v4165_v28 = vpack.c.bf16 %v1724_v59, %v1721_v60 }
 0xbe1   :  { %v1728_v22 = vpack.c.bf16 %v1684_v21, %v1680_v20 }
 0xbe3   :  { %v1734_v24 = vsel %vm394_vm1, %v1728_v22, 0 }
 0xbe4   :  { %3348 = vmatpush3.bf16.xpose.msra.mxu1 %v1734_v24 }
 0xbe5   :  { %3353 = vmatprep.subr.bf16.mxu1 %v3846_v4 }
 0xbeb   :  { %3350 = vmatmul.mubr.msk.bf16.vlgmr.msra.gmra.mxu1 %vm394_vm1, %v1727_v51 }
 0xbec   :  { %3354 = vmatpush3.bf16.msra.mxu1 %v4165_v28  ;;  %3355 = vmatprep.mubr.msk.bf16.mxu1 %vm3848_vm0, %v3846_v4 }
 0xbed   :  { %3359 = vmatprep.subr.bf16.mxu1 %v3846_v4 }
 0xcab   :  { %v1770_v54 = vpop.f32.mrf.mxu1 }
 0xcac   :  { %v1771_v29 = vadd.f32 %v4175_v56, %v1770_v54 }
 0xcad   :  { %v3351_v30 = vpop.f32.mrf.mxu1 }
 0xcae   :  { %v1777_v31 = vsel %vm442_vm2, %v1771_v29, -inf }
 0xcaf   :  { %1778 = vmax.xlane.f32.xlu0 %v1777_v31  ;;  %v1773_v32 = vpop.f32.mrf.mxu1 }
 0xcb0   :  { %v1774_v34 = vadd.f32 %v4182_v33, %v1773_v32 }
 0xcb1   :  { %v3352_v35 = vpop.f32.mrf.mxu1 }
 0xcb2   :  { %v1780_v36 = vsel %vm442_vm2, %v1774_v34, -inf }
 0xcb3   :  { %1781 = vmax.xlane.f32.xlu1 %v1780_v36 }
 0xd38   :  { %v1779_v37 = vpop.xlane.xlu0 %1778 }
 0xd39   :  { %v1783_v38 = vsub.f32 %v1771_v29, %v1779_v37 }
 0xd3b   :  { %v1785_v39 = vmul.f32 1.442695, %v1783_v38 }
 0xd3c   :  { %v1782_v40 = vpop.xlane.xlu1 %1781 }
 0xd3d   :  { %3700 = vpow2.f32 %v1785_v39  ;;  %v1784_v41 = vsub.f32 %v1774_v34, %v1782_v40 }
 0xd3f   :  { %v1787_v42 = vmul.f32 1.442695, %v1784_v41 }
 0xd41   :  { %3702 = vpow2.f32 %v1787_v42 }
 0xd4a   :  { %v3701_v43 = vpop.eup %3700 }
 0xd4b   :  { %v1789_v44 = vsel %vm442_vm2, %v3701_v43, 0.0 }
 0xd4c   :  { %1790 = vadd.xlane.f32.xlu0 %v1789_v44 }
 0xd4e   :  { %v3703_v45 = vpop.eup %3702 }
 0xd4f   :  { %v1792_v46 = vsel %vm442_vm2, %v3703_v45, 0.0 }
 0xd50   :  { %1793 = vadd.xlane.f32.xlu1 %v1792_v46 }
 0xd61   :  { %1845 = vrot.lane.b32.xlu1 %v1727_v51, %s3849_s2 }
 0xd62   :  { %1848 = vrot.lane.b32.xlu0 %v1728_v22, %s3849_s2 }
 0xd65   :  { %1970 = vrot.lane.b32.xlu1 %v1728_v22, %s3843_s25 }
 0xd66   :  { %2091 = vrot.lane.b32.xlu0 %v1728_v22, %s3850_s17 }
 0xd69   :  { %1968 = vrot.lane.b32.xlu1 %v1727_v51, %s3843_s25 }
 0xd6d   :  { %2089 = vrot.lane.b32.xlu1 %v1727_v51, %s3850_s17 }
 0xdd5   :  { %v1791_v47 = vpop.xlane.xlu0 %1790 }
 0xdd6   :  { %3704 = vrcp.f32 %v1791_v47 }
 0xdd9   :  { %v1794_v48 = vpop.xlane.xlu1 %1793  ;;  %v1849_v52 = vpop.permute.xlu0 %1848 }
 0xdda   :  { %3706 = vrcp.f32 %v1794_v48  ;;  %v1854_v6 = vsel %vm394_vm1, %v1849_v52, 0 }
 0xddd   :  { %v1846_v49 = vpop.permute.xlu1 %1845  ;;  %v2092_v63 = vpop.permute.xlu0 %2091 }
 0xdde   :  { %v2097_v3 = vsel %vm394_vm1, %v2092_v63, 0 }
 0xde1   :  { %v1971_v53 = vpop.permute.xlu1 %1970 }
 0xde2   :  { %v1976_v57 = vsel %vm394_vm1, %v1971_v53, 0 }
 0xde3   :  { %3372 = vmatpush3.bf16.xpose.msra.mxu0 %v1976_v57  ;;  %v3705_v61 = vpop.eup %3704 }
 0xde4   :  { %3383 = vmatprep.subr.bf16.mxu0 %v3846_v4  ;;  %v1797_v0 = vmul.f32 %v3705_v61, %v3701_v43 }
 0xde5   :  { %v1969_v2 = vpop.permute.xlu1 %1968 }
 0xde7   :  { %v3707_v62 = vpop.eup %3706 }
 0xde8   :  { %v1798_v1 = vmul.f32 %v3707_v62, %v3703_v45 }
 0xde9   :  { %v2090_v8 = vpop.permute.xlu1 %2089 }
 0xdea   :  { %3374 = vmatmul.mubr.msk.bf16.vlgmr.msra.gmra.mxu0 %vm394_vm1, %v1969_v2  ;;  %v1799_v5 = vpack.c.bf16 %v1798_v1, %v1797_v0 }
 0xdeb   :  { %3384 = vmatpush3.bf16.xpose.msra.mxu0 %v2097_v3  ;;  %3385 = vmatprep.mubr.msk.bf16.mxu0 %vm3848_vm0, %v3846_v4 }
 0xdec   :  { %3356 = vmatmul.mubr.msk.bf16.vlgmr.msra.gmra.mxu1 %vm442_vm2, %v1799_v5  ;;  %3395 = vmatprep.subr.bf16.mxu0 %v3846_v4 }
 0xded   :  { %3360 = vmatpush3.bf16.xpose.msra.mxu1 %v1854_v6  ;;  %3361 = vmatprep.mubr.msk.bf16.mxu1 %vm3848_vm0, %v3846_v4 }
 0xdee   :  { %3365 = vmatprep.subr.bf16.mxu1 %v3846_v4 }
 0xdf2   :  { %3386 = vmatmul.mubr.msk.bf16.vlgmr.msra.gmra.mxu0 %vm394_vm1, %v2090_v8 }
 0xdf3   :  { %3411 = vmatprep.mubr.msk.bf16.mxu0 %vm3848_vm0, %v3846_v4 }
 0xdf4   :  { %3362 = vmatmul.mubr.msk.bf16.vlgmr.msra.gmra.mxu1 %vm394_vm1, %v1846_v49 }
 0xdf5   :  { %3367 = vmatprep.mubr.msk.bf16.mxu1 %vm3848_vm0, %v3846_v4 }
 0xeaa   :  { %v2012_v9 = vpop.f32.mrf.mxu0 }
 0xeab   :  { %v2013_v24 = vadd.f32 %v4175_v56, %v2012_v9 }
 0xeac   :  { %v4212_v10 = vpop.f32.mrf.mxu1  ;;  %v3375_v11 = vpop.f32.mrf.mxu0 }
 0xead   :  { %v2019_v29 = vsel %vm442_vm2, %v2013_v24, -inf }
 0xeae   :  { %v3357_v12 = vpop.f32.mrf.mxu1  ;;  %v2015_v14 = vpop.f32.mrf.mxu0 }
 0xeaf   :  { %v2016_v51 = vadd.f32 %v4182_v33, %v2015_v14 }
 0xeb0   :  { %v4214_v15 = vpop.f32.mrf.mxu1  ;;  %v3376_v16 = vpop.f32.mrf.mxu0 }
 0xeb1   :  { %v2022_v32 = vsel %vm442_vm2, %v2016_v51, -inf }
 0xeb2   :  { %v3358_v17 = vpop.f32.mrf.mxu1  ;;  %v2133_v18 = vpop.f32.mrf.mxu0 }
 0xeb3   :  { %v2134_v31 = vadd.f32 %v4175_v56, %v2133_v18 }
 0xeb4   :  { %v1890_v19 = vpop.f32.mrf.mxu1  ;;  %v3387_v20 = vpop.f32.mrf.mxu0 }
 0xeb5   :  { %v1891_v21 = vadd.f32 %v4175_v56, %v1890_v19  ;;  %v2140_v35 = vsel %vm442_vm2, %v2134_v31, -inf }
 0xeb6   :  { %v3363_v22 = vpop.f32.mrf.mxu1  ;;  %v2136_v23 = vpop.f32.mrf.mxu0 }
 0xeb7   :  { %v1897_v50 = vsel %vm442_vm2, %v1891_v21, -inf  ;;  %v2137_v54 = vadd.f32 %v4182_v33, %v2136_v23 }
 0xeb8   :  { %v3388_v25 = vpop.f32.mrf.mxu0  ;;  %1898 = vmax.xlane.f32.xlu0 %v1897_v50  ;;  %v1893_v59 = vpop.f32.mrf.mxu1 }
 0xeb9   :  { %v1894_v26 = vadd.f32 %v4182_v33, %v1893_v59  ;;  %v2143_v34 = vsel %vm442_vm2, %v2137_v54, -inf }
 0xeba   :  { %v3364_v60 = vpop.f32.mrf.mxu1 }
 0xebb   :  { %v1900_v30 = vsel %vm442_vm2, %v1894_v26, -inf }
 0xebc   :  { %2020 = vmax.xlane.f32.xlu0 %v2019_v29  ;;  %1901 = vmax.xlane.f32.xlu1 %v1900_v30 }
 0xec0   :  { %2023 = vmax.xlane.f32.xlu0 %v2022_v32  ;;  %2144 = vmax.xlane.f32.xlu1 %v2143_v34  ;;  %v3592_v34 = vld [vmem:[#allocation2 + $0x2dc] ss:$24 sps:$4 sm:$0xff]  }
 0xec1   :  { %3396 = vmatpush3.bf16.msra.mxu0 %v3592_v34  ;;  %v3606_v34 = vld [vmem:[#allocation2 + $0x280] ss:$24 sps:$4 sm:$0xff]  }
 0xec2   :  { %3397 = vmatprep.subr.bf16.mxu0 %v3846_v4 }
 0xec4   :  { %2141 = vmax.xlane.f32.xlu0 %v2140_v35  ;;  %v3593_v35 = vld [vmem:[#allocation2 + $0x2ac] ss:$24 sps:$4 sm:$0xff]  }
 0xec5   :  { %3398 = vmatpush3.bf16.msra.mxu0 %v3593_v35  ;;  %v3609_v35 = vld [vmem:[#allocation2 + $0x250] ss:$24 sps:$4 sm:$0xff]  }
 0xec6   :  { %3399 = vmatprep.subr.bf16.mxu0 %v3846_v4 }
 0xf41   :  { %v1899_v36 = vpop.xlane.xlu0 %1898 }
 0xf42   :  { %v1903_v56 = vsub.f32 %v1891_v21, %v1899_v36  ;;  %v3594_v36 = vld [vmem:[#allocation2 + $0x27c] ss:$24 sps:$4 sm:$0xff]  }
 0xf43   :  { %3400 = vmatpush3.bf16.msra.mxu0 %v3594_v36  ;;  %v3611_v36 = vld [vmem:[#allocation2 + $0x254] ss:$24 sps:$4 sm:$0xff]  }
 0xf44   :  { %v1905_v49 = vmul.f32 1.442695, %v1903_v56  ;;  %3401 = vmatprep.subr.bf16.mxu0 %v3846_v4 }
 0xf45   :  { %v2021_v37 = vpop.xlane.xlu0 %2020  ;;  %v1902_v33 = vpop.xlane.xlu1 %1901 }
 0xf46   :  { %v2025_v38 = vsub.f32 %v2013_v24, %v2021_v37  ;;  %v1904_v44 = vsub.f32 %v1894_v26, %v1902_v33  ;;  %v3595_v37 = vld [vmem:[#allocation2 + $0x24c] ss:$24 sps:$4 sm:$0xff]   ;;  %v3596_v33 = vld [vmem:[#allocation2 + $0x21c] ss:$24 sps:$4 sm:$0xff]  }
 0xf47   :  { %3402 = vmatpush3.bf16.msra.mxu0 %v3595_v37  ;;  %v3614_v37 = vld [vmem:[#allocation2 + $0x224] ss:$24 sps:$4 sm:$0xff]  }
 0xf48   :  { %v2027_v39 = vmul.f32 1.442695, %v2025_v38  ;;  %v1907_v52 = vmul.f32 1.442695, %v1904_v44  ;;  %3403 = vmatprep.subr.bf16.mxu0 %v3846_v4 }
 0xf49   :  { %v2024_v40 = vpop.xlane.xlu0 %2023  ;;  %v2145_v41 = vpop.xlane.xlu1 %2144 }
 0xf4a   :  { %3708 = vpow2.f32 %v2027_v39  ;;  %v2026_v42 = vsub.f32 %v2016_v51, %v2024_v40  ;;  %v2147_v43 = vsub.f32 %v2137_v54, %v2145_v41  ;;  %v3597_v39 = vld [vmem:[#allocation2 + $0x1ec] ss:$24 sps:$4 sm:$0xff]  }
 0xf4b   :  { %3404 = vmatpush3.bf16.msra.mxu0 %v3596_v33  ;;  %v3612_v33 = vld [vmem:[#allocation2 + $0x220] ss:$24 sps:$4 sm:$0xff]  }
 0xf4c   :  { %v2029_v45 = vmul.f32 1.442695, %v2026_v42  ;;  %v2150_v46 = vmul.f32 1.442695, %v2147_v43  ;;  %3405 = vmatprep.subr.bf16.mxu0 %v3846_v4  ;;  %v3598_v42 = vld [vmem:[#allocation2 + $0x1bc] ss:$24 sps:$4 sm:$0xff]  }
 0xf4d   :  { %v2142_v47 = vpop.xlane.xlu0 %2141 }
 0xf4e   :  { %3710 = vpow2.f32 %v2029_v45  ;;  %v2146_v48 = vsub.f32 %v2134_v31, %v2142_v47  ;;  %v3599_v45 = vld [vmem:[#allocation2 + $0x18c] ss:$24 sps:$4 sm:$0xff]  }
 0xf4f   :  { %3712 = vpow2.f32 %v2150_v46  ;;  %3406 = vmatpush3.bf16.msra.mxu0 %v3597_v39  ;;  %v3620_v39 = vld [vmem:[#allocation2 + $0x1c4] ss:$24 sps:$4 sm:$0xff]  }
 0xf50   :  { %v2148_v53 = vmul.f32 1.442695, %v2146_v48  ;;  %3407 = vmatprep.subr.bf16.mxu0 %v3846_v4 }
 0xf52   :  { %3714 = vpow2.f32 %v2148_v53 }
 0xf53   :  { %3716 = vpow2.f32 %v1905_v49  ;;  %3408 = vmatpush3.bf16.msra.mxu0 %v3598_v42  ;;  %v3621_v42 = vld [vmem:[#allocation2 + $0x190] ss:$24 sps:$4 sm:$0xff]  }
 0xf54   :  { %3718 = vpow2.f32 %v1907_v52  ;;  %3409 = vmatprep.subr.bf16.mxu0 %v3846_v4 }
 0xf57   :  { %v3709_v57 = vpop.eup %3708  ;;  %3410 = vmatpush3.bf16.msra.mxu0 %v3599_v45 }
 0xf58   :  { %v2031_v61 = vsel %vm442_vm2, %v3709_v57, 0.0 }
 0xf59   :  { %2032 = vadd.xlane.f32.xlu0 %v2031_v61 }
 0xf5b   :  { %v3711_v62 = vpop.eup %3710 }
 0xf5c   :  { %v2034_v63 = vsel %vm442_vm2, %v3711_v62, 0.0  ;;  %v3713_v0 = vpop.eup %3712 }
 0xf5d   :  { %2035 = vadd.xlane.f32.xlu1 %v2034_v63  ;;  %v2155_v5 = vsel %vm442_vm2, %v3713_v0, 0.0 }
 0xf5f   :  { %v3715_v1 = vpop.eup %3714 }
 0xf60   :  { %v3717_v2 = vpop.eup %3716  ;;  %v2152_v3 = vsel %vm442_vm2, %v3715_v1, 0.0 }
 0xf61   :  { %v3719_v6 = vpop.eup %3718  ;;  %2153 = vadd.xlane.f32.xlu0 %v2152_v3  ;;  %2156 = vadd.xlane.f32.xlu1 %v2155_v5  ;;  %v1909_v8 = vsel %vm442_vm2, %v3717_v2, 0.0 }
 0xf62   :  { %v1912_v9 = vsel %vm442_vm2, %v3719_v6, 0.0 }
 0xf65   :  { %1910 = vadd.xlane.f32.xlu0 %v1909_v8  ;;  %1913 = vadd.xlane.f32.xlu1 %v1912_v9 }
 0xf76   :  { %2042 = vrot.lane.b32.xlu1 %v4165_v28, %s3843_s25 }
 0xf7a   :  { %2163 = vrot.lane.b32.xlu1 %v4165_v28, %s3850_s17 }
 0xf7b   :  { %1921 = vrot.lane.b32.xlu0 %v4165_v28, %s3849_s2 }
 0xfe2   :  { %v2033_v11 = vpop.xlane.xlu0 %2032 }
 0xfe6   :  { %v2036_v12 = vpop.xlane.xlu1 %2035 }
 0xfea   :  { %v2154_v14 = vpop.xlane.xlu0 %2153  ;;  %v2157_v16 = vpop.xlane.xlu1 %2156 }
 0xfee   :  { %v1911_v17 = vpop.xlane.xlu0 %1910  ;;  %v1914_v18 = vpop.xlane.xlu1 %1913 }
 0xfef   :  { %3720 = vrcp.f32 %v1911_v17 }
 0xff0   :  { %3722 = vrcp.f32 %v1914_v18 }
 0xff1   :  { %3724 = vrcp.f32 %v2036_v12 }
 0xff2   :  { %v1922_v19 = vpop.permute.xlu0 %1921  ;;  %3726 = vrcp.f32 %v2033_v11  ;;  %v2043_v50 = vpop.permute.xlu1 %2042 }
 0xff3   :  { %3366 = vmatpush3.bf16.msra.mxu1 %v1922_v19  ;;  %3728 = vrcp.f32 %v2154_v14  ;;  %v3031_v19 = vld [vmem:[#allocation4 + $0xa] ss:$0 sm:$0xff] }
 0xff4   :  { %3377 = vmatprep.subr.bf16.mxu1 %v3846_v4  ;;  %3730 = vrcp.f32 %v2157_v16 }
 0xff6   :  { %v2164_v29 = vpop.permute.xlu1 %2163 }
 0xffc   :  { %v3721_v20 = vpop.eup %3720 }
 0xffd   :  { %v3723_v21 = vpop.eup %3722  ;;  %v1917_v22 = vmul.f32 %v3721_v20, %v3717_v2 }
 0xffe   :  { %v1918_v28 = vmul.f32 %v3723_v21, %v3719_v6  ;;  %v3725_v24 = vpop.eup %3724 }
 0xfff   :  { %v3727_v25 = vpop.eup %3726  ;;  %v2040_v59 = vmul.f32 %v3725_v24, %v3711_v62 }
0x1000   :  { %v1919_v23 = vpack.c.bf16 %v1918_v28, %v1917_v22  ;;  %v2039_v26 = vmul.f32 %v3727_v25, %v3709_v57  ;;  %v3729_v60 = vpop.eup %3728  ;;  %v3602_v25 = vld [vmem:[#allocation2 + $0x2e4] ss:$24 sps:$4 sm:$0xff]  }
0x1001   :  { %v3731_v54 = vpop.eup %3730  ;;  %v2160_v30 = vmul.f32 %v3729_v60, %v3715_v1 }
0x1002   :  { %3368 = vmatmul.mubr.msk.bf16.vlgmr.msra.gmra.mxu1 %vm442_vm2, %v1919_v23  ;;  %v2041_v51 = vpack.c.bf16 %v2040_v59, %v2039_v26  ;;  %v2161_v31 = vmul.f32 %v3731_v54, %v3713_v0 }
0x1003   :  { %3378 = vmatpush3.bf16.msra.mxu1 %v2043_v50  ;;  %3379 = vmatprep.mubr.msk.bf16.mxu1 %vm3848_vm0, %v3846_v4  ;;  %v3600_v50 = vld [vmem:[#allocation2 + $0x2e0] ss:$24 sps:$4 sm:$0xff]  }
0x1004   :  { %3389 = vmatprep.subr.bf16.mxu1 %v3846_v4  ;;  %v2162_v32 = vpack.c.bf16 %v2161_v31, %v2160_v30  ;;  %v3605_v31 = vld [vmem:[#allocation2 + $0x2b4] ss:$24 sps:$4 sm:$0xff]  }
0x100a   :  { %3380 = vmatmul.mubr.msk.bf16.vlgmr.msra.gmra.mxu1 %vm442_vm2, %v2041_v51 }
0x100b   :  { %3390 = vmatpush3.bf16.msra.mxu1 %v2164_v29  ;;  %3391 = vmatprep.mubr.msk.bf16.mxu1 %vm3848_vm0, %v3846_v4 }
0x100c   :  { %2501 = vmatprep.subr.bf16.mxu1 %v3602_v25 }
0x1012   :  { %3392 = vmatmul.mubr.msk.bf16.vlgmr.msra.gmra.mxu1 %vm442_vm2, %v2162_v32  ;;  %v3603_v32 = vld [vmem:[#allocation2 + $0x2b0] ss:$24 sps:$4 sm:$0xff]  }
0x1013   :  { %2533 = vmatprep.mubr.bf16.mxu1 %v3847_v27  ;;  %2502 = vmatpush1.bf16.msra.mxu1 %v3600_v50 }
0x1014   :  { %2503 = vmatprep.subr.bf16.mxu1 %v3605_v31 }
0x1017   :  { %2504 = vmatpush1.bf16.msra.mxu1 %v3603_v32 }
0x10c2   :  { %v1961_v38 = vpop.f32.mrf.mxu1 }
0x10c4   :  { %v3369_v27 = vpop.f32.mrf.mxu1 }
0x10c5   :  { %v3615_v27 = vld [vmem:[#allocation2 + $0x1f0] ss:$24 sps:$4 sm:$0xff]  }
0x10c6   :  { %v1964_v40 = vpop.f32.mrf.mxu1 }
0x10c7   :  { %v3465_v41 = vpack.i.bf16 %v1964_v40, %v1961_v38  ;;  %v3617_v38 = vld [vmem:[#allocation2 + $0x1f4] ss:$24 sps:$4 sm:$0xff]   ;;  %v3618_v40 = vld [vmem:[#allocation2 + $0x1c0] ss:$24 sps:$4 sm:$0xff]  }
0x10c8   :  { %v3370_v43 = vpop.f32.mrf.mxu1 }
0x10c9   :  { %3466 = vrot.lane.b32.xlu1 %v3465_v41, %s3850_s17  ;;  %v3623_v41 = vld [vmem:[#allocation2 + $0x194] ss:$24 sps:$4 sm:$0xff]  }
0x10ca   :  { %v2082_v56 = vpop.f32.mrf.mxu1 }
0x10cc   :  { %v3381_v44 = vpop.f32.mrf.mxu1 }
0x10ce   :  { %v2085_v46 = vpop.f32.mrf.mxu1 }
0x10cf   :  { %v3470_v47 = vpack.i.bf16 %v2085_v46, %v2082_v56 }
0x10d0   :  { %v3382_v48 = vpop.f32.mrf.mxu1 }
0x10d1   :  { %3471 = vrot.lane.b32.xlu0 %v3470_v47, %s3843_s25 }
0x10d2   :  { %v2203_v49 = vpop.f32.mrf.mxu1 }
0x10d4   :  { %v3393_v52 = vpop.f32.mrf.mxu1 }
0x10d5   :  { %v3040_v52 = vld [vmem:[#allocation6 + $0x4] ss:$0 sm:$0xff] }
0x10d6   :  { %v2206_v53 = vpop.f32.mrf.mxu1 }
0x10d7   :  { %v3475_v57 = vpack.i.bf16 %v2206_v53, %v2203_v49 }
0x10d8   :  { %v3394_v61 = vpop.f32.mrf.mxu1 }
0x10d9   :  { %3476 = vrot.lane.b32.xlu1 %v3475_v57, %s3849_s2 }
0x113b   :  { %v3467_v62 = vpop.permute.xlu1 %3466 }
0x113c   :  { %v3469_v0 = vunpack.i.h.bf16 %v3467_v62  ;;  %v3468_v1 = vunpack.i.l.bf16 %v3467_v62  ;;  %v3041_v62 = vld [vmem:[#allocation6 + $0x5] ss:$0 sm:$0xff] }
0x113e   :  { %v2235_v6 = vsel %vm394_vm1, %v4214_v15, %v3469_v0  ;;  %v2234_v8 = vsel %vm394_vm1, %v4212_v10, %v3468_v1 }
0x1143   :  { %v3472_v63 = vpop.permute.xlu0 %3471 }
0x1144   :  { %v3474_v2 = vunpack.i.h.bf16 %v3472_v63  ;;  %v3473_v3 = vunpack.i.l.bf16 %v3472_v63 }
0x1146   :  { %v2237_v12 = vsel %vm902_vm3, %v2235_v6, %v3474_v2  ;;  %v2236_v14 = vsel %vm902_vm3, %v2234_v8, %v3473_v3  ;;  %v3624_v3 = vld [vmem:[%s4351_s4 + $0xf8] sm:$0xff]   ;;  %v3626_v6 = vld [vmem:[%s4351_s4 + $0xf0] sm:$0xff]  }
0x1147   :  { %3208 = vmatprep.subr.bf16.mxu0 %v3624_v3  ;;  %v3627_v8 = vld [vmem:[%s4351_s4 + $0xb0] sm:$0xff]  }
0x114b   :  { %v3477_v5 = vpop.permute.xlu1 %3476 }
0x114c   :  { %v3479_v9 = vunpack.i.h.bf16 %v3477_v5  ;;  %v3478_v11 = vunpack.i.l.bf16 %v3477_v5  ;;  %v3625_v5 = vld [vmem:[%s4351_s4 + $0xb8] sm:$0xff]  }
0x114e   :  { %v2239_v16 = vsel %vm905_vm4, %v2237_v12, %v3479_v9  ;;  %v2238_v17 = vsel %vm905_vm4, %v2236_v14, %v3478_v11  ;;  %v3628_v9 = vld [vmem:[%s4351_s4 + $0xe8] sm:$0xff]   ;;  %v3630_v12 = vld [vmem:[%s4351_s4 + $0xe0] sm:$0xff]  }
0x114f   :  { %v2256_v18 = vpack.c.bf16 %v2239_v16, %v2238_v17  ;;  %v3629_v11 = vld [vmem:[%s4351_s4 + $0xa8] sm:$0xff]   ;;  %v3631_v14 = vld [vmem:[%s4351_s4 + $0xa0] sm:$0xff]   ;;  %v3632_v16 = vld [vmem:[%s4351_s4 + $0xd8] sm:$0xff]  }
0x1150   :  { %v3633_v17 = vld [vmem:[%s4351_s4 + $0x98] sm:$0xff]  }
0x1151   :  { %3412 = vmatmul.mubr.bf16.vlgmr.msra.gmra.mxu0 %v2256_v18  ;;  %v3634_v18 = vld [vmem:[%s4351_s4 + $0xd0] sm:$0xff]  }
0x1152   :  { %3209 = vmatpush3.bf16.msra.mxu0 %v3625_v5 }
0x1153   :  { %3210 = vmatprep.subr.bf16.mxu0 %v3626_v6 }
0x1156   :  { %3211 = vmatpush3.bf16.msra.mxu0 %v3627_v8 }
0x1157   :  { %3212 = vmatprep.subr.bf16.mxu0 %v3628_v9 }
0x115a   :  { %3213 = vmatpush3.bf16.msra.mxu0 %v3629_v11  ;;  %v3090_v11 = vld [vmem:[#allocation4 + $0xd] ss:$0 sm:$0xff] }
0x115b   :  { %3214 = vmatprep.subr.bf16.mxu0 %v3630_v12 }
0x115e   :  { %3215 = vmatpush3.bf16.msra.mxu0 %v3631_v14 }
0x115f   :  { %3216 = vmatprep.subr.bf16.mxu0 %v3632_v16 }
0x1162   :  { %3217 = vmatpush3.bf16.msra.mxu0 %v3633_v17 }
0x1163   :  { %3218 = vmatprep.subr.bf16.mxu0 %v3634_v18 }
0x1211   :  { %v2346_v20 = vpop.f32.mrf.mxu0 }
0x1212   :  { %v2347_v21 = vadd.f32 %v3031_v19, %v2346_v20  ;;  %v3636_v20 = vld [vmem:[%s4351_s4 + $0xc8] sm:$0xff]  }
0x1213   :  { %v3413_v22 = vpop.f32.mrf.mxu0 }
0x1214   :  { %v2353_v15 = vadd.f32 %v2347_v21, %v4149_v7  ;;  %v3637_v21 = vld [vmem:[%s4351_s4 + $0x88] sm:$0xff]   ;;  %v3638_v22 = vld [vmem:[%s4351_s4 + $0xc0] sm:$0xff]  }
0x1215   :  { %v2349_v28 = vpop.f32.mrf.mxu0 }
0x1216   :  { %v2350_v10 = vadd.f32 %v3031_v19, %v2349_v28  ;;  %2358 = vadd.xlane.f32.xlu0 %v2353_v15  ;;  %v3635_v19 = vld [vmem:[%s4351_s4 + $0x90] sm:$0xff]   ;;  %v2409_v28 = vld [vmem:[#allocation4 + $0xb] sm:$0x3] }
0x1217   :  { %v3414_v23 = vpop.f32.mrf.mxu0  ;;  %3219 = vmatpush3.bf16.msra.mxu0 %v3635_v19 }
0x1218   :  { %v2354_v24 = vadd.f32 %v2350_v10, %v4151_v13  ;;  %v3608_v13 = vld [vmem:[#allocation2 + $0x284] ss:$24 sps:$4 sm:$0xff]   ;;  %3220 = vmatprep.subr.bf16.mxu0 %v3636_v20  ;;  %v2414_v10 = vrot.slane %v2409_v28, %v3965_v55  ;;  %v2418_v23 = vrot.slane %v2409_v28, %v3969_v58 }
0x1219   :  { %2505 = vmatprep.subr.bf16.mxu1 %v3608_v13 }
0x121a   :  { %2360 = vadd.xlane.f32.xlu1 %v2354_v24  ;;  %2506 = vmatpush1.bf16.msra.mxu1 %v3606_v34 }
0x121b   :  { %2507 = vmatprep.subr.bf16.mxu1 %v3611_v36  ;;  %3221 = vmatpush3.bf16.msra.mxu0 %v3637_v21 }
0x121c   :  { %3222 = vmatprep.subr.bf16.mxu0 %v3638_v22 }
0x121e   :  { %2508 = vmatpush1.bf16.msra.mxu1 %v3609_v35 }
0x121f   :  { %2509 = vmatprep.subr.bf16.mxu1 %v3614_v37 }
0x1222   :  { %2510 = vmatpush1.bf16.msra.mxu1 %v3612_v33 }
0x1223   :  { %2511 = vmatprep.subr.bf16.mxu1 %v3617_v38 }
0x1226   :  { %2512 = vmatpush1.bf16.msra.mxu1 %v3615_v27 }
0x1227   :  { %2513 = vmatprep.subr.bf16.mxu1 %v3620_v39 }
0x122a   :  { %2514 = vmatpush1.bf16.msra.mxu1 %v3618_v40 }
0x122b   :  { %2515 = vmatprep.subr.bf16.mxu1 %v3623_v41 }
0x122e   :  { %2516 = vmatpush1.bf16.msra.mxu1 %v3621_v42 }
0x122f   :  { %3415 = vmatprep.subr.bf16.mxu1 %v3846_v4 }
0x129f   :  { %v2359_v59 = vpop.xlane.xlu0 %2358 }
0x12a0   :  { %v2362_v26 = vmul.f32 0.0078125, %v2359_v59 }
0x12a2   :  { %v2364_v60 = vsub.f32 %v2353_v15, %v2362_v26  ;;  %v3639_v15 = vld [vmem:[%s4351_s4 + $0x80] sm:$0xff]  }
0x12a3   :  { %v2361_v51 = vpop.xlane.xlu1 %2360  ;;  %3223 = vmatpush3.bf16.msra.mxu0 %v3639_v15  ;;  %v3640_v15 = vld [vmem:[#allocation7 + $0x38] sm:$0xff]  }
0x12a4   :  { %v2363_v54 = vmul.f32 0.0078125, %v2361_v51  ;;  %v2366_v29 = vmul.f32 %v2364_v60, %v2364_v60 }
0x12a6   :  { %v2365_v30 = vsub.f32 %v2354_v24, %v2363_v54  ;;  %2368 = vadd.xlane.f32.xlu0 %v2366_v29 }
0x12a8   :  { %v2367_v7 = vmul.f32 %v2365_v30, %v2365_v30 }
0x12aa   :  { %2370 = vadd.xlane.f32.xlu0 %v2367_v7 }
0x132f   :  { %v2369_v43 = vpop.xlane.xlu0 %2368 }
0x1330   :  { %v2372_v56 = vmul.f32 0.0078125, %v2369_v43 }
0x1332   :  { %v2374_v44 = vadd.f32 1e-12, %v2372_v56 }
0x1333   :  { %v2371_v45 = vpop.xlane.xlu0 %2370 }
0x1334   :  { %3732 = vrsqrt.f32 %v2374_v44  ;;  %v2373_v46 = vmul.f32 0.0078125, %v2371_v45 }
0x1336   :  { %v2375_v47 = vadd.f32 1e-12, %v2373_v46 }
0x1338   :  { %3734 = vrsqrt.f32 %v2375_v47 }
0x1341   :  { %v3733_v48 = vpop.eup %3732 }
0x1342   :  { %v2378_v49 = vmul.f32 %v3733_v48, %v2364_v60 }
0x1344   :  { %v2384_v61 = vmul.f32 %v3040_v52, %v2378_v49 }
0x1345   :  { %v3735_v53 = vpop.eup %3734 }
0x1346   :  { %v2379_v57 = vmul.f32 %v3735_v53, %v2365_v30  ;;  %v4271_v0 = vadd.f32 %v3041_v62, %v2384_v61 }
0x1348   :  { %v2385_v63 = vmul.f32 %v3040_v52, %v2379_v57 }
0x134a   :  { %v4273_v1 = vadd.f32 %v3041_v62, %v2385_v63 }
0x134c   :  { %v2408_v2 = vpack.c.bf16 %v4273_v1, %v4271_v0 }
0x134e   :  { %2534 = vmatmul.mubr.bf16.vlgmr.msra.gmra.mxu1 %v2408_v2 }
0x134f   :  { %3431 = vmatprep.mubr.msk.bf16.mxu1 %vm3848_vm0, %v3846_v4  ;;  %3416 = vmatpush3.bf16.msra.mxu1 %v3640_v15 }
0x1350   :  { %3417 = vmatprep.subr.bf16.mxu1 %v3846_v4 }
0x140e   :  { %v2535_v24 = vpop.f32.mrf.mxu1 }
0x140f   :  { %v2536_v50 = vadd.f32 %v2535_v24, %v2414_v10 }
0x1410   :  { %v2537_v25 = vpop.f32.mrf.mxu1 }
0x1411   :  { %v2548_v59 = vmul.f32 0.044715, %v2536_v50  ;;  %v2538_v26 = vadd.f32 %v2537_v25, %v2418_v23  ;;  %v2544_v62 = vmul.f32 0.5, %v2536_v50 }
0x1412   :  { %v2539_v60 = vpop.f32.mrf.mxu1 }
0x1413   :  { %v2552_v51 = vmul.f32 %v2548_v59, %v2536_v50  ;;  %v2549_v54 = vmul.f32 0.044715, %v2538_v26  ;;  %v2540_v29 = vadd.f32 %v2539_v60, %v2414_v10  ;;  %v2545_v53 = vmul.f32 0.5, %v2538_v26  ;;  %v3643_v60 = vld [vmem:[#allocation7 + $0x20] sm:$0xff]  }
0x1414   :  { %v2541_v30 = vpop.f32.mrf.mxu1 }
0x1415   :  { %v2556_v7 = vmul.f32 %v2552_v51, %v2536_v50  ;;  %v2553_v31 = vmul.f32 %v2549_v54, %v2538_v26  ;;  %v2550_v32 = vmul.f32 0.044715, %v2540_v29  ;;  %v2542_v13 = vadd.f32 %v2541_v30, %v2418_v23  ;;  %v3644_v51 = vld [vmem:[#allocation7 + $0x18] sm:$0xff]   ;;  %v3645_v54 = vld [vmem:[#allocation7 + $0x10] sm:$0xff]   ;;  %v3647_v30 = vld [vmem:[#allocation7] sm:$0xff]  }
0x1416   :  { %v2546_v49 = vmul.f32 0.5, %v2540_v29 }
0x1417   :  { %v2560_v34 = vadd.f32 %v2556_v7, %v2536_v50  ;;  %v2557_v35 = vmul.f32 %v2553_v31, %v2538_v26  ;;  %v2554_v36 = vmul.f32 %v2550_v32, %v2540_v29  ;;  %v2551_v55 = vmul.f32 0.044715, %v2542_v13 }
0x1418   :  { %v2547_v57 = vmul.f32 0.5, %v2542_v13 }
0x1419   :  { %v2558_v37 = vmul.f32 %v2554_v36, %v2540_v29  ;;  %v2555_v58 = vmul.f32 %v2551_v55, %v2542_v13  ;;  %v2561_v33 = vadd.f32 %v2557_v35, %v2538_v26  ;;  %v2564_v38 = vmul.f32 0.7978846, %v2560_v34 }
0x141b   :  { %v2562_v27 = vadd.f32 %v2558_v37, %v2540_v29  ;;  %v2559_v39 = vmul.f32 %v2555_v58, %v2542_v13  ;;  %v2565_v40 = vmul.f32 0.7978846, %v2561_v33  ;;  %v3646_v29 = vld [vmem:[#allocation7 + $0x8] sm:$0xff]   ;;  %v3107_v37 = vld [vmem:[#allocation6 + $0x6] ss:$0 sm:$0xff] }
0x141d   :  { %v2566_v41 = vmul.f32 0.7978846, %v2562_v27  ;;  %v2563_v42 = vadd.f32 %v2559_v39, %v2542_v13  ;;  %3736 = vtanh.f32 %v2565_v40  ;;  %v3108_v27 = vld [vmem:[#allocation6 + $0x7] ss:$0 sm:$0xff] }
0x141e   :  { %3738 = vtanh.f32 %v2564_v38 }
0x141f   :  { %3740 = vtanh.f32 %v2566_v41  ;;  %v2567_v43 = vmul.f32 0.7978846, %v2563_v42  ;;  %v3109_v42 = vld [vmem:[%s4355_s8] ss:$0 sm:$0xff] }
0x1421   :  { %3742 = vtanh.f32 %v2567_v43 }
0x142a   :  { %v3737_v56 = vpop.eup %3736 }
0x142b   :  { %v3739_v44 = vpop.eup %3738  ;;  %v2573_v46 = vadd.f32 1.0, %v3737_v56 }
0x142c   :  { %v3741_v45 = vpop.eup %3740  ;;  %v2572_v52 = vadd.f32 1.0, %v3739_v44 }
0x142d   :  { %v2574_v47 = vadd.f32 1.0, %v3741_v45  ;;  %v2577_v2 = vmul.f32 %v2573_v46, %v2545_v53 }
0x142e   :  { %v3743_v48 = vpop.eup %3742  ;;  %v2576_v5 = vmul.f32 %v2572_v52, %v2544_v62 }
0x142f   :  { %v2575_v61 = vadd.f32 1.0, %v3743_v48  ;;  %v2578_v63 = vmul.f32 %v2574_v47, %v2546_v49 }
0x1431   :  { %v2579_v3 = vmul.f32 %v2575_v61, %v2547_v57  ;;  %v2613_v8 = vpack.c.bf16 %v2578_v63, %v2576_v5 }
0x1433   :  { %v2614_v6 = vpack.c.bf16 %v2579_v3, %v2577_v2 }
0x1435   :  { %2750 = vmatprep.mubr.bf16.mxu0 %v2614_v6 }
0x1436   :  { %2751 = vmatmul.mubr.bf16.vlgmr.msra.gmra.mxu0 %v2613_v8 }
0x14f6   :  { %v3224_v9 = vpop.f32.mrf.mxu0 }
0x14f8   :  { %v3225_v12 = vpop.f32.mrf.mxu0 }
0x14f9   :  { %v3226_v14 = vadd.f32 %v3225_v12, %v3224_v9 }
0x14fa   :  { %v3227_v16 = vpop.f32.mrf.mxu0 }
0x14fb   :  { %v2753_v17 = vadd.f32 %v3226_v14, %v3090_v11 }
0x14fc   :  { %v3228_v18 = vpop.f32.mrf.mxu0 }
0x14fd   :  { %v3229_v19 = vadd.f32 %v3228_v18, %v3227_v16  ;;  %v2759_v20 = vadd.f32 %v2753_v17, %v4271_v0  ;;  %v3641_v0 = vld [vmem:[#allocation7 + $0x30] sm:$0xff]  }
0x14fe   :  { %3418 = vmatpush3.bf16.msra.mxu1 %v3641_v0 }
0x14ff   :  { %v2756_v21 = vadd.f32 %v3229_v19, %v3090_v11  ;;  %2763 = vadd.xlane.f32.xlu0 %v2759_v20  ;;  %3419 = vmatprep.subr.bf16.mxu1 %v3846_v4 }
0x1501   :  { %v2760_v22 = vadd.f32 %v2756_v21, %v4273_v1  ;;  %v3642_v1 = vld [vmem:[#allocation7 + $0x28] sm:$0xff]  }
0x1502   :  { %3420 = vmatpush3.bf16.msra.mxu1 %v3642_v1 }
0x1503   :  { %2765 = vadd.xlane.f32.xlu1 %v2760_v22  ;;  %3421 = vmatprep.subr.bf16.mxu1 %v3846_v4 }
0x1506   :  { %3422 = vmatpush3.bf16.msra.mxu1 %v3643_v60 }
0x1507   :  { %3423 = vmatprep.subr.bf16.mxu1 %v3846_v4 }
0x150a   :  { %3424 = vmatpush3.bf16.msra.mxu1 %v3644_v51 }
0x150b   :  { %3425 = vmatprep.subr.bf16.mxu1 %v3846_v4 }
0x150e   :  { %3426 = vmatpush3.bf16.msra.mxu1 %v3645_v54 }
0x150f   :  { %3427 = vmatprep.subr.bf16.mxu1 %v3846_v4 }
0x1512   :  { %3428 = vmatpush3.bf16.msra.mxu1 %v3646_v29 }
0x1513   :  { %3429 = vmatprep.subr.bf16.mxu1 %v3846_v4 }
0x1516   :  { %3430 = vmatpush3.bf16.msra.mxu1 %v3647_v30 }
0x1588   :  { %v2764_v28 = vpop.xlane.xlu0 %2763 }
0x1589   :  { %v2767_v10 = vmul.f32 0.0078125, %v2764_v28 }
0x158b   :  { %v2769_v23 = vsub.f32 %v2759_v20, %v2767_v10 }
0x158c   :  { %v2766_v24 = vpop.xlane.xlu1 %2765 }
0x158d   :  { %v2768_v50 = vmul.f32 0.0078125, %v2766_v24  ;;  %v2771_v25 = vmul.f32 %v2769_v23, %v2769_v23 }
0x158f   :  { %v2770_v59 = vsub.f32 %v2760_v22, %v2768_v50  ;;  %2773 = vadd.xlane.f32.xlu0 %v2771_v25 }
0x1591   :  { %v2772_v26 = vmul.f32 %v2770_v59, %v2770_v59 }
0x1593   :  { %2775 = vadd.xlane.f32.xlu1 %v2772_v26 }
0x1618   :  { %v2774_v7 = vpop.xlane.xlu0 %2773 }
0x1619   :  { %v2777_v31 = vmul.f32 0.0078125, %v2774_v7 }
0x161b   :  { %v2779_v32 = vadd.f32 1e-12, %v2777_v31 }
0x161c   :  { %v2776_v13 = vpop.xlane.xlu1 %2775 }
0x161d   :  { %3744 = vrsqrt.f32 %v2779_v32  ;;  %v2778_v34 = vmul.f32 0.0078125, %v2776_v13 }
0x161f   :  { %v2780_v35 = vadd.f32 1e-12, %v2778_v34 }
0x1621   :  { %3746 = vrsqrt.f32 %v2780_v35 }
0x162a   :  { %v3745_v36 = vpop.eup %3744 }
0x162b   :  { %v2783_v55 = vmul.f32 %v3745_v36, %v2769_v23 }
0x162d   :  { %v2789_v38 = vmul.f32 %v3107_v37, %v2783_v55 }
0x162e   :  { %v3747_v58 = vpop.eup %3746 }
0x162f   :  { %v2784_v33 = vmul.f32 %v3747_v58, %v2770_v59  ;;  %v2795_v40 = vadd.f32 %v3108_v27, %v2789_v38 }
0x1631   :  { %v2790_v39 = vmul.f32 %v3107_v37, %v2784_v33 }
0x1633   :  { %v2796_v41 = vadd.f32 %v3108_v27, %v2790_v39 }
0x1635   :  { %v2813_v4 = vpack.c.bf16 %v2796_v41, %v2795_v40 }
0x1637   :  { %3432 = vmatmul.mubr.bf16.vlgmr.msra.gmra.mxu1 %v2813_v4 }
0x16f7   :  { %v2903_v43 = vpop.f32.mrf.mxu1 }
0x16f8   :  { %v2904_v56 = vadd.f32 %v3109_v42, %v2903_v43 }
0x16f9   :  { %v3433_v44 = vpop.f32.mrf.mxu1 }
0x16fa   :  { %2910 = vst [vmem:[%s4356_s9] sm:$0xff] %v2904_v56 }
0x16fb   :  { %v2906_v45 = vpop.f32.mrf.mxu1 }
0x16fc   :  { %v2907_v46 = vadd.f32 %v3109_v42, %v2906_v45 }
0x16fd   :  { %v3434_v47 = vpop.f32.mrf.mxu1 }
0x16fe   :  { %2911 = vst [vmem:[%s4356_s9 + $0x8] sm:$0xff] %v2907_v46 }
0x16ff   :  { %2916 = vsyncpa [#allocation3], 1 }
0x1700   :  { %2917 = vsyncpa [#allocation5], 1 }
0x1701   :  { %2918 = vsyncpa [#allocation8], 1 }

</bundles_post_ra>
